<compile_context>
chip_gen: v5e
topology: v5e:2x2
jax: 0.10.0
libtpu: 0.0.40
codegen_flags: <defaults>
</compile_context>

<pallas_src>
import functools

import jax
import jax.numpy as jnp
from jax.experimental import pallas as pl
from jax.experimental.pallas import tpu as pltpu


def _round_up(a, m):
    return (a + m - 1) // m * m


# -----------------------------------------------------------------------------
# Fused Pallas kernel: one (batch, time-tile) per grid step.
#   sid_ref: (1, 1, Cp, Tt + 4*pad)  halo-extended skeleton-id window, bf16
#   x_ref  : (1, Cp, Tt)             input to modulate, f32
#   w1_ref : (Hp, K*Cp)              packed layer-1 weights (gamma rows, beta rows), bf16
#   b1_ref : (Hp, 1)                 layer-1 bias, f32
#   w2_ref : (K, 2*Cp, Hp)           per-tap block-diagonal layer-2 weights, bf16
#   b2_ref : (2*Cp, 1)               layer-2 bias, f32
#   o_ref  : (1, Cp, Tt)             output, f32
#   h_ref  : (Hp, Tt + 2*pad)        VMEM scratch: hidden activations + halo, bf16
# -----------------------------------------------------------------------------
def _spade_fused_kernel(sid_ref, x_ref, w1_ref, b1_ref, w2_ref, b2_ref, o_ref,
                        h_ref, *, K, pad, t_tile, c_pad, neg_slope):
    ti = pl.program_id(1)
    n_t = pl.num_programs(1)
    wh = t_tile + 2 * pad            # hidden columns needed: output tile + layer-2 halo

    def lrelu(a):
        return jnp.where(a >= 0.0, a, neg_slope * a)

    # --- layer 1: masked Conv1d over the halo-extended sid window -----------
    # im2col from K wide lane-offset slices (XLU lane rotations), one MXU matmul
    # with contraction K*Cp instead of K shallow dots.
    sid = sid_ref[0, 0]                                       # (Cp, Tt + 4*pad) bf16
    cols = jnp.concatenate([sid[:, k:k + wh] for k in range(K)], axis=0)
    h = jnp.dot(w1_ref[...], cols, preferred_element_type=jnp.float32)
    h = lrelu(h + b1_ref[...])                                # (Hp, wh) f32
    h_ref[...] = h.astype(h_ref.dtype)                        # cast to bf16 once

    # --- reflect hidden activations only at the true sequence ends ----------
    # (interior tiles already hold a real halo recomputed from real sid data)
    if pad > 0:
        @pl.when(ti == 0)
        def _():
            for j in range(pad):                              # h_p[j] = h[pad - j]
                src = 2 * pad - j
                h_ref[:, j:j + 1] = h_ref[:, src:src + 1]

        @pl.when(ti == n_t - 1)
        def _():
            for j in range(t_tile + pad, t_tile + 2 * pad):   # h_p[...] = h[2(T-1)-...]
                src = 2 * (t_tile + pad - 1) - j
                h_ref[:, j:j + 1] = h_ref[:, src:src + 1]

    # --- layer 2: per-tap accumulation; no (K*Hp, T) im2col buffer ----------
    acc = None
    for k in range(K):
        tap = jnp.dot(w2_ref[k], h_ref[:, k:k + t_tile],
                      preferred_element_type=jnp.float32)     # (2*Cp, Tt) f32
        acc = tap if acc is None else acc + tap
    gb = lrelu(acc + b2_ref[...])

    gamma = gb[:c_pad, :]
    beta = gb[c_pad:, :]

    # --- SPADE modulation, lane-dense store ----------------------------------
    x = x_ref[0]                                              # (Cp, Tt) f32
    o_ref[0] = (x * (1.0 + gamma) + beta).astype(o_ref.dtype)


def _choose_t_tile(T):
    if T <= 1024:
        return T
    for cand in (2048, 1024, 512, 256, 128):
        if T % cand == 0:
            return cand
    # TODO(synk): pad T / handle a ragged last tile for awkward sequence lengths.
    return T


# -----------------------------------------------------------------------------
# Wrapper: one pallas_call, grid = (batch, time tiles).
# -----------------------------------------------------------------------------
def spade_forward(x_nct, sid_nct, w1, b1, w2, b2, *, K, pad, c_pad,
                  neg_slope=0.2, t_tile=None):
    N, C, T = x_nct.shape
    assert sid_nct.shape == (N, C, T)
    assert K % 2 == 1 and pad == (K - 1) // 2
    assert T >= 2 * pad + 1, "reflect padding requires T >= 2*pad + 1"

    hp = w1.shape[0]                     # 2 * Chid_p
    assert w1.shape == (hp, K * c_pad)
    assert w2.shape == (K, 2 * c_pad, hp)

    if t_tile is None:
        t_tile = _choose_t_tile(T)
    assert T % t_tile == 0, "time axis must be divisible by the time tile"
    assert t_tile == T or t_tile % 128 == 0
    assert t_tile > 2 * pad
    n_t = T // t_tile

    # Channel padding to a sublane multiple + bf16 sid (matmul operand only).
    if c_pad != C:
        cp_pad = ((0, 0), (0, c_pad - C), (0, 0))
        x_p = jnp.pad(x_nct, cp_pad)
        sid_p = jnp.pad(sid_nct, cp_pad)
    else:
        x_p, sid_p = x_nct, sid_nct
    sid_p = sid_p.astype(jnp.bfloat16)

    # Halo-extended sid windows: (N, n_t, Cp, Tt + 4*pad).  Reflection is applied
    # only at the true sequence ends; interior tiles get a real halo.
    t_win = t_tile + 4 * pad
    sid_ext = jnp.pad(sid_p, ((0, 0), (0, 0), (2 * pad, 2 * pad)), mode="reflect")
    if n_t == 1:
        sid_win = sid_ext[:, None]
    else:
        sid_win = jnp.stack(
            [sid_ext[:, :, i * t_tile:i * t_tile + t_win] for i in range(n_t)],
            axis=1)

    kernel = functools.partial(_spade_fused_kernel, K=K, pad=pad, t_tile=t_tile,
                               c_pad=c_pad, neg_slope=neg_slope)

    out = pl.pallas_call(
        kernel,
        out_shape=jax.ShapeDtypeStruct((N, c_pad, T), jnp.float32),
        grid=(N, n_t),
        in_specs=[
            pl.BlockSpec((1, 1, c_pad, t_win), lambda n, t: (n, t, 0, 0)),  # sid window
            pl.BlockSpec((1, c_pad, t_tile), lambda n, t: (n, 0, t)),       # x tile
            pl.BlockSpec(w1.shape, lambda n, t: (0, 0)),                    # packed W1
            pl.BlockSpec(b1.shape, lambda n, t: (0, 0)),                    # b1
            pl.BlockSpec(w2.shape, lambda n, t: (0, 0, 0)),                 # packed W2
            pl.BlockSpec(b2.shape, lambda n, t: (0, 0)),                    # b2
        ],
        out_specs=pl.BlockSpec((1, c_pad, t_tile), lambda n, t: (n, 0, t)),
        scratch_shapes=[
            pltpu.VMEM((hp, t_tile + 2 * pad), jnp.bfloat16),               # hidden + halo
        ],
        compiler_params=pltpu.CompilerParams(
            dimension_semantics=("parallel", "parallel"),
            vmem_limit_bytes=32 * 1024 * 1024),   # working set ~2 MB at t_tile=1024
    )(sid_win, x_p, w1, b1, w2, b2)

    return out[:, :C, :] if c_pad != C else out


# -----------------------------------------------------------------------------
# Skeleton structure helpers (deterministic, synthetic parameters)
# -----------------------------------------------------------------------------
def get_neighbor(parents, contacts, threshold=2, enforce_contact=True):
    """Slot adjacency: joints within tree-distance<=threshold; contact & global
    slots connected to everything (enforce_contact)."""
    J = len(parents)
    S = J + len(contacts) + 1            # joints + contact slots + global slot
    INF = 10 ** 6
    dist = [[0 if i == j else INF for j in range(J)] for i in range(J)]
    for j, p in enumerate(parents):
        if p >= 0:
            dist[j][p] = dist[p][j] = 1
    for k in range(J):
        for i in range(J):
            for j in range(J):
                d = dist[i][k] + dist[k][j]
                if d < dist[i][j]:
                    dist[i][j] = d
    adj = [[0] * S for _ in range(S)]
    for i in range(J):
        for j in range(J):
            if dist[i][j] <= threshold:
                adj[i][j] = 1
    for ci, cj in enumerate(contacts):
        s = J + ci
        for j in range(S):
            if enforce_contact:
                adj[s][j] = adj[j][s] = 1
            elif j < J and dist[cj][j] <= threshold:
                adj[s][j] = adj[j][s] = 1
        adj[s][s] = 1
    g = S - 1                            # global slot
    for j in range(S):
        adj[g][j] = adj[j][g] = 1
    return jnp.asarray(adj, dtype=jnp.float32)


def get_channels_list(num_features, num_slots):
    # [C, 2*C, C]: two masked conv layers per SkeletonBlock.
    return [num_features, 2 * num_features, num_features]


def make_skeleton_block_params(key, channels, num_slots, slot_adj, kernel_size):
    """Deterministic weights/biases for a stack of masked Conv1d layers.

    Returns list of (w, b) with w: (K, Cin, Cout) already neighbor-masked (f32).
    """
    params = []
    for li in range(len(channels) - 1):
        cin, cout = channels[li], channels[li + 1]
        in_per, out_per = cin // num_slots, cout // num_slots
        key, kw, kb = jax.random.split(key, 3)
        w = jax.random.normal(kw, (kernel_size, cin, cout), jnp.float32) * 0.1
        b = jax.random.normal(kb, (cout,), jnp.float32) * 0.05
        in_slot = jnp.arange(cin) // in_per
        out_slot = jnp.arange(cout) // out_per
        mask = slot_adj[in_slot[:, None], out_slot[None, :]]     # (Cin, Cout)
        params.append((w * mask[None, :, :], b))
    return params


# -----------------------------------------------------------------------------
# Pure-JAX reference (layer-by-layer, f32) for correctness checking.
# -----------------------------------------------------------------------------
def spade_reference(x, sid, params, *, K, pad, neg_slope=0.2):
    hi = jax.lax.Precision.HIGHEST

    def conv1d_reflect(a, w, b):                # a: (N, Cin, T), w: (K, Cin, Cout)
        T = a.shape[-1]
        ap = jnp.pad(a, ((0, 0), (0, 0), (pad, pad)), mode="reflect")
        out = b[None, :, None]
        for k in range(K):
            out = out + jnp.einsum("nct,co->not", ap[:, :, k:k + T], w[k],
                                   precision=hi)
        return out

    def lrelu(a):
        return jnp.where(a >= 0.0, a, neg_slope * a)

    def branch(w1, b1, w2, b2):
        h = lrelu(conv1d_reflect(sid, w1, b1))
        return lrelu(conv1d_reflect(h, w2, b2))

    gamma = branch(*params["gamma"])
    beta = branch(*params["beta"])
    return x * (1.0 + gamma) + beta


# -----------------------------------------------------------------------------
# Spade module (forward only)
# -----------------------------------------------------------------------------
class SpadePallas:
    def __init__(self, parents, contacts, kernel_size, seed=0,
                 matmul_dtype=jnp.bfloat16):
        assert kernel_size % 2 == 1
        self.kernel_size = kernel_size
        self.pad = (kernel_size - 1) // 2
        self.num_slots = len(parents) + len(contacts) + 1
        self.num_features = self.num_slots * 6

        slot_adj = get_neighbor(parents, contacts, threshold=2,
                                enforce_contact=True)
        channels = get_channels_list(self.num_features, self.num_slots)
        C, Chid = channels[0], channels[1]
        K = kernel_size
        self.C = C
        self.c_pad = _round_up(C, 8)                 # sublane-aligned channel count
        chid_p = _round_up(Chid, 8)
        self.hp = 2 * chid_p

        kg, kb = jax.random.split(jax.random.PRNGKey(seed))
        (wg1, bg1), (wg2, bg2) = make_skeleton_block_params(
            kg, channels, self.num_slots, slot_adj, kernel_size)
        (wb1, bb1), (wb2, bb2) = make_skeleton_block_params(
            kb, channels, self.num_slots, slot_adj, kernel_size)

        # Quantize weights once (kernel matmuls are bf16 w/ f32 accumulation);
        # keep the de-quantized copies for the pure-JAX reference check.
        q = lambda w: w.astype(matmul_dtype).astype(jnp.float32)
        wg1, wg2, wb1, wb2 = q(wg1), q(wg2), q(wb1), q(wb2)
        self.reference_params = dict(gamma=(wg1, bg1, wg2, bg2),
                                     beta=(wb1, bb1, wb2, bb2))

        cp, hp = self.c_pad, self.hp

        def pack_l1(w):                              # (K, C, Chid) -> (Chid, K*cp)
            out = jnp.zeros((Chid, K * cp), jnp.float32)
            for k in range(K):
                out = out.at[:, k * cp:k * cp + C].set(w[k].T)
            return out

        # Layer 1: gamma hidden rows stacked above beta hidden rows (padded).
        w1 = jnp.zeros((hp, K * cp), jnp.float32)
        w1 = w1.at[:Chid, :].set(pack_l1(wg1))
        w1 = w1.at[chid_p:chid_p + Chid, :].set(pack_l1(wb1))
        self.w1 = w1.astype(matmul_dtype)
        b1 = jnp.zeros((hp, 1), jnp.float32)
        self.b1 = b1.at[:Chid, 0].set(bg1).at[chid_p:chid_p + Chid, 0].set(bb1)

        # Layer 2: per-tap block-diagonal so one matmul per tap serves both branches.
        w2 = jnp.zeros((K, 2 * cp, hp), jnp.float32)
        w2 = w2.at[:, :C, :Chid].set(jnp.transpose(wg2, (0, 2, 1)))
        w2 = w2.at[:, cp:cp + C, chid_p:chid_p + Chid].set(
            jnp.transpose(wb2, (0, 2, 1)))
        self.w2 = w2.astype(matmul_dtype)
        b2 = jnp.zeros((2 * cp, 1), jnp.float32)
        self.b2 = b2.at[:C, 0].set(bg2).at[cp:cp + C, 0].set(bb2)

    def __call__(self, x_nct, skeleton_id_map_nct, t_tile=None):
        return spade_forward(x_nct, skeleton_id_map_nct,
                             self.w1, self.b1, self.w2, self.b2,
                             K=self.kernel_size, pad=self.pad,
                             c_pad=self.c_pad, t_tile=t_tile)


if __name__ == "__main__":
    # Tiny skeleton: 4 joints in a chain, 1 contact joint -> 6 slots -> 36 channels.
    parents = [-1, 0, 1, 2]
    contacts = [3]
    kernel_size = 3

    module = SpadePallas(parents, contacts, kernel_size, seed=0)
    C = module.num_features

    key = jax.random.PRNGKey(0)

    # --- small single-tile case ---------------------------------------------
    N, T = 2, 16
    kx, ks, key = jax.random.split(key, 3)
    x = jax.random.normal(kx, (N, C, T), jnp.float32)
    sid = jax.random.normal(ks, (N, C, T), jnp.float32)

    out = module(x, sid)
    jax.block_until_ready(out)
    assert out.shape == (N, C, T) and out.dtype == jnp.float32
    assert bool(jnp.all(jnp.isfinite(out)))

    sid_q = sid.astype(jnp.bfloat16).astype(jnp.float32)
    ref = spade_reference(x, sid_q, module.reference_params,
                          K=kernel_size, pad=module.pad)
    err = float(jnp.max(jnp.abs(out - ref)))
    assert err < 0.35, f"single-tile mismatch vs reference: max abs err = {err}"

    # --- multi-tile case (exercises time tiling, halo and boundary reflect) --
    N2, T2, tile2 = 1, 384, 128
    kx2, ks2 = jax.random.split(key)
    x2 = jax.random.normal(kx2, (N2, C, T2), jnp.float32)
    sid2 = jax.random.normal(ks2, (N2, C, T2), jnp.float32)

    out2 = module(x2, sid2, t_tile=tile2)
    jax.block_until_ready(out2)
    assert out2.shape == (N2, C, T2)
    assert bool(jnp.all(jnp.isfinite(out2)))

    sid2_q = sid2.astype(jnp.bfloat16).astype(jnp.float32)
    ref2 = spade_reference(x2, sid2_q, module.reference_params,
                           K=kernel_size, pad=module.pad)
    err2 = float(jnp.max(jnp.abs(out2 - ref2)))
    assert err2 < 0.35, f"tiled mismatch vs reference: max abs err = {err2}"

    print("KERNEL_OK")
</pallas_src>

<mosaic_0001>
module attributes {stable_mosaic.version = 11 : i64} {
  func.func @_spade_fused_kernel(%arg0: i32, %arg1: i32, %arg2: memref<1x1x40x20xbf16, #tpu.memory_space<vmem>>, %arg3: memref<1x40x16xf32, #tpu.memory_space<vmem>>, %arg4: memref<144x120xbf16, #tpu.memory_space<vmem>>, %arg5: memref<144x1xf32, #tpu.memory_space<vmem>>, %arg6: memref<3x80x144xbf16, #tpu.memory_space<vmem>>, %arg7: memref<80x1xf32, #tpu.memory_space<vmem>>, %arg8: memref<1x40x16xf32, #tpu.memory_space<vmem>>, %arg9: memref<144x18xbf16, #tpu.memory_space<vmem>>) attributes {dimension_semantics = [#tpu.dimension_semantics<parallel>, #tpu.dimension_semantics<parallel>], iteration_bounds = array<i64: 2, 1>, scalar_prefetch = 0 : i64, scratch_operands = 1 : i64, tpu.core_type = #tpu.core_type<tc>, window_params = [{transform_indices = @transform_0, window_bounds = array<i64: 1, 1, 40, 20>}, {transform_indices = @transform_1, window_bounds = array<i64: 1, 40, 16>}, {pipeline_mode = #tpu.pipeline_mode<synchronous>, transform_indices = @transform_2, window_bounds = array<i64: 144, 120>}, {pipeline_mode = #tpu.pipeline_mode<synchronous>, transform_indices = @transform_3, window_bounds = array<i64: 144, 1>}, {pipeline_mode = #tpu.pipeline_mode<synchronous>, transform_indices = @transform_4, window_bounds = array<i64: 3, 80, 144>}, {pipeline_mode = #tpu.pipeline_mode<synchronous>, transform_indices = @transform_5, window_bounds = array<i64: 80, 1>}, {transform_indices = @transform_6, window_bounds = array<i64: 1, 40, 16>}]} {
    %c0 = arith.constant 0 : index
    %c0_0 = arith.constant 0 : index
    %c0_1 = arith.constant 0 : index
    %c0_2 = arith.constant 0 : index
    %0 = vector.load %arg2[%c0, %c0_0, %c0_1, %c0_2] : memref<1x1x40x20xbf16, #tpu.memory_space<vmem>>, vector<1x1x40x20xbf16>
    %1 = vector.shape_cast %0 : vector<1x1x40x20xbf16> to vector<40x20xbf16>
    %2 = vector.extract_strided_slice %1 {offsets = [0, 0], sizes = [40, 18], strides = [1, 1]} : vector<40x20xbf16> to vector<40x18xbf16>
    %3 = vector.extract_strided_slice %1 {offsets = [0, 1], sizes = [40, 18], strides = [1, 1]} : vector<40x20xbf16> to vector<40x18xbf16>
    %4 = vector.extract_strided_slice %1 {offsets = [0, 2], sizes = [40, 18], strides = [1, 1]} : vector<40x20xbf16> to vector<40x18xbf16>
    %5 = tpu.concatenate %2, %3, %4 in 0 : vector<40x18xbf16>, vector<40x18xbf16>, vector<40x18xbf16> -> vector<120x18xbf16>
    %c0_3 = arith.constant 0 : index
    %c0_4 = arith.constant 0 : index
    %6 = vector.load %arg4[%c0_3, %c0_4] : memref<144x120xbf16, #tpu.memory_space<vmem>>, vector<144x120xbf16>
    %cst = arith.constant dense<0.000000e+00> : vector<144x18xf32>
    %7 = tpu.matmul %6, %5, %cst {dimension_numbers = #tpu.dot_dimension_numbers<[1], [0], [0], [1], [0, 0, 1, 1], [], []>} : vector<144x120xbf16>, vector<120x18xbf16>, vector<144x18xf32> -> vector<144x18xf32>
    %c0_5 = arith.constant 0 : index
    %c0_6 = arith.constant 0 : index
    %8 = vector.load %arg5[%c0_5, %c0_6] : memref<144x1xf32, #tpu.memory_space<vmem>>, vector<144x1xf32>
    %9 = vector.broadcast %8 : vector<144x1xf32> to vector<144x18xf32>
    %10 = arith.addf %7, %9 : vector<144x18xf32>
    %cst_7 = arith.constant 0.000000e+00 : f32
    %11 = vector.broadcast %cst_7 : f32 to vector<144x18xf32>
    %12 = arith.cmpf oge, %10, %11 : vector<144x18xf32>
    %cst_8 = arith.constant 2.000000e-01 : f32
    %13 = vector.broadcast %cst_8 : f32 to vector<144x18xf32>
    %14 = arith.mulf %13, %10 : vector<144x18xf32>
    %15 = arith.select %12, %10, %14 : vector<144x18xi1>, vector<144x18xf32>
    %16 = arith.truncf %15 : vector<144x18xf32> to vector<144x18xbf16>
    %c0_9 = arith.constant 0 : index
    %c0_10 = arith.constant 0 : index
    %17 = vector.load %arg9[%c0_9, %c0_10] : memref<144x18xbf16, #tpu.memory_space<vmem>>, vector<144x18xbf16>
    tpu.vector_store %arg9[%c0_9, %c0_10], %16 {strides = array<i32>} : memref<144x18xbf16, #tpu.memory_space<vmem>>, vector<144x18xbf16>,
    %c0_i32 = arith.constant 0 : i32
    %18 = arith.cmpi eq, %arg1, %c0_i32 : i32
    %19 = arith.extui %18 : i1 to i32
    %c0_i32_11 = arith.constant 0 : i32
    %20 = arith.cmpi ne, %19, %c0_i32_11 : i32
    scf.if %20 {
      %c0_41 = arith.constant 0 : index
      %c2_42 = arith.constant 2 : index
      %57 = vector.load %arg9[%c0_41, %c2_42] : memref<144x18xbf16, #tpu.memory_space<vmem>>, vector<144x1xbf16>
      %c0_43 = arith.constant 0 : index
      %c0_44 = arith.constant 0 : index
      %58 = vector.load %arg9[%c0_43, %c0_44] : memref<144x18xbf16, #tpu.memory_space<vmem>>, vector<144x1xbf16>
      tpu.vector_store %arg9[%c0_43, %c0_44], %57 {strides = array<i32>} : memref<144x18xbf16, #tpu.memory_space<vmem>>, vector<144x1xbf16>,
    } else {
    }
    %c0_i32_12 = arith.constant 0 : i32
    %21 = arith.cmpi eq, %arg1, %c0_i32_12 : i32
    %22 = arith.extui %21 : i1 to i32
    %c0_i32_13 = arith.constant 0 : i32
    %23 = arith.cmpi ne, %22, %c0_i32_13 : i32
    scf.if %23 {
      %c0_41 = arith.constant 0 : index
      %c15 = arith.constant 15 : index
      %57 = vector.load %arg9[%c0_41, %c15] : memref<144x18xbf16, #tpu.memory_space<vmem>>, vector<144x1xbf16>
      %c0_42 = arith.constant 0 : index
      %c17 = arith.constant 17 : index
      %58 = vector.load %arg9[%c0_42, %c17] : memref<144x18xbf16, #tpu.memory_space<vmem>>, vector<144x1xbf16>
      tpu.vector_store %arg9[%c0_42, %c17], %57 {strides = array<i32>} : memref<144x18xbf16, #tpu.memory_space<vmem>>, vector<144x1xbf16>,
    } else {
    }
    %c0_14 = arith.constant 0 : index
    %c0_15 = arith.constant 0 : index
    %c0_16 = arith.constant 0 : index
    %24 = vector.load %arg6[%c0_14, %c0_15, %c0_16] : memref<3x80x144xbf16, #tpu.memory_space<vmem>>, vector<1x80x144xbf16>
    %25 = vector.shape_cast %24 : vector<1x80x144xbf16> to vector<80x144xbf16>
    %c0_17 = arith.constant 0 : index
    %c0_18 = arith.constant 0 : index
    %26 = vector.load %arg9[%c0_17, %c0_18] : memref<144x18xbf16, #tpu.memory_space<vmem>>, vector<144x16xbf16>
    %cst_19 = arith.constant dense<0.000000e+00> : vector<80x16xf32>
    %27 = tpu.matmul %25, %26, %cst_19 {dimension_numbers = #tpu.dot_dimension_numbers<[1], [0], [0], [1], [0, 0, 1, 1], [], []>} : vector<80x144xbf16>, vector<144x16xbf16>, vector<80x16xf32> -> vector<80x16xf32>
    %c1 = arith.constant 1 : index
    %c0_20 = arith.constant 0 : index
    %c0_21 = arith.constant 0 : index
    %28 = vector.load %arg6[%c1, %c0_20, %c0_21] : memref<3x80x144xbf16, #tpu.memory_space<vmem>>, vector<1x80x144xbf16>
    %29 = vector.shape_cast %28 : vector<1x80x144xbf16> to vector<80x144xbf16>
    %c0_22 = arith.constant 0 : index
    %c1_23 = arith.constant 1 : index
    %30 = vector.load %arg9[%c0_22, %c1_23] : memref<144x18xbf16, #tpu.memory_space<vmem>>, vector<144x16xbf16>
    %cst_24 = arith.constant dense<0.000000e+00> : vector<80x16xf32>
    %31 = tpu.matmul %29, %30, %cst_24 {dimension_numbers = #tpu.dot_dimension_numbers<[1], [0], [0], [1], [0, 0, 1, 1], [], []>} : vector<80x144xbf16>, vector<144x16xbf16>, vector<80x16xf32> -> vector<80x16xf32>
    %32 = arith.addf %27, %31 : vector<80x16xf32>
    %c2 = arith.constant 2 : index
    %c0_25 = arith.constant 0 : index
    %c0_26 = arith.constant 0 : index
    %33 = vector.load %arg6[%c2, %c0_25, %c0_26] : memref<3x80x144xbf16, #tpu.memory_space<vmem>>, vector<1x80x144xbf16>
    %34 = vector.shape_cast %33 : vector<1x80x144xbf16> to vector<80x144xbf16>
    %c0_27 = arith.constant 0 : index
    %c2_28 = arith.constant 2 : index
    %35 = vector.load %arg9[%c0_27, %c2_28] : memref<144x18xbf16, #tpu.memory_space<vmem>>, vector<144x16xbf16>
    %cst_29 = arith.constant dense<0.000000e+00> : vector<80x16xf32>
    %36 = tpu.matmul %34, %35, %cst_29 {dimension_numbers = #tpu.dot_dimension_numbers<[1], [0], [0], [1], [0, 0, 1, 1], [], []>} : vector<80x144xbf16>, vector<144x16xbf16>, vector<80x16xf32> -> vector<80x16xf32>
    %37 = arith.addf %32, %36 : vector<80x16xf32>
    %c0_30 = arith.constant 0 : index
    %c0_31 = arith.constant 0 : index
    %38 = vector.load %arg7[%c0_30, %c0_31] : memref<80x1xf32, #tpu.memory_space<vmem>>, vector<80x1xf32>
    %39 = vector.broadcast %38 : vector<80x1xf32> to vector<80x16xf32>
    %40 = arith.addf %37, %39 : vector<80x16xf32>
    %cst_32 = arith.constant 0.000000e+00 : f32
    %41 = vector.broadcast %cst_32 : f32 to vector<80x16xf32>
    %42 = arith.cmpf oge, %40, %41 : vector<80x16xf32>
    %cst_33 = arith.constant 2.000000e-01 : f32
    %43 = vector.broadcast %cst_33 : f32 to vector<80x16xf32>
    %44 = arith.mulf %43, %40 : vector<80x16xf32>
    %45 = arith.select %42, %40, %44 : vector<80x16xi1>, vector<80x16xf32>
    %46 = vector.extract_strided_slice %45 {offsets = [0, 0], sizes = [40, 16], strides = [1, 1]} : vector<80x16xf32> to vector<40x16xf32>
    %47 = vector.extract_strided_slice %45 {offsets = [40, 0], sizes = [40, 16], strides = [1, 1]} : vector<80x16xf32> to vector<40x16xf32>
    %c0_34 = arith.constant 0 : index
    %c0_35 = arith.constant 0 : index
    %c0_36 = arith.constant 0 : index
    %48 = vector.load %arg3[%c0_34, %c0_35, %c0_36] : memref<1x40x16xf32, #tpu.memory_space<vmem>>, vector<1x40x16xf32>
    %49 = vector.shape_cast %48 : vector<1x40x16xf32> to vector<40x16xf32>
    %cst_37 = arith.constant 1.000000e+00 : f32
    %50 = vector.broadcast %cst_37 : f32 to vector<40x16xf32>
    %51 = arith.addf %50, %46 : vector<40x16xf32>
    %52 = arith.mulf %49, %51 : vector<40x16xf32>
    %53 = arith.addf %52, %47 : vector<40x16xf32>
    %c0_38 = arith.constant 0 : index
    %c0_39 = arith.constant 0 : index
    %c0_40 = arith.constant 0 : index
    %54 = vector.load %arg8[%c0_38, %c0_39, %c0_40] : memref<1x40x16xf32, #tpu.memory_space<vmem>>, vector<1x40x16xf32>
    %55 = vector.shape_cast %54 : vector<1x40x16xf32> to vector<40x16xf32>
    %56 = vector.shape_cast %53 : vector<40x16xf32> to vector<1x40x16xf32>
    tpu.vector_store %arg8[%c0_38, %c0_39, %c0_40], %56 {strides = array<i32>} : memref<1x40x16xf32, #tpu.memory_space<vmem>>, vector<1x40x16xf32>,
    return
  }
  func.func @transform_0(%arg0: i32, %arg1: i32) -> (i32, i32, i32, i32) {
    %c0_i32 = arith.constant 0 : i32
    %c0_i32_0 = arith.constant 0 : i32
    %c0_i32_1 = arith.constant 0 : i32
    return %arg0, %arg1, %c0_i32, %c0_i32_0 : i32, i32, i32, i32
  }
  func.func @transform_1(%arg0: i32, %arg1: i32) -> (i32, i32, i32) {
    %c0_i32 = arith.constant 0 : i32
    %c0_i32_0 = arith.constant 0 : i32
    return %arg0, %c0_i32, %arg1 : i32, i32, i32
  }
  func.func @transform_2(%arg0: i32, %arg1: i32) -> (i32, i32) {
    %c0_i32 = arith.constant 0 : i32
    %c0_i32_0 = arith.constant 0 : i32
    %c0_i32_1 = arith.constant 0 : i32
    return %c0_i32, %c0_i32_0 : i32, i32
  }
  func.func @transform_3(%arg0: i32, %arg1: i32) -> (i32, i32) {
    %c0_i32 = arith.constant 0 : i32
    %c0_i32_0 = arith.constant 0 : i32
    %c0_i32_1 = arith.constant 0 : i32
    return %c0_i32, %c0_i32_0 : i32, i32
  }
  func.func @transform_4(%arg0: i32, %arg1: i32) -> (i32, i32, i32) {
    %c0_i32 = arith.constant 0 : i32
    %c0_i32_0 = arith.constant 0 : i32
    %c0_i32_1 = arith.constant 0 : i32
    %c0_i32_2 = arith.constant 0 : i32
    return %c0_i32, %c0_i32_0, %c0_i32_1 : i32, i32, i32
  }
  func.func @transform_5(%arg0: i32, %arg1: i32) -> (i32, i32) {
    %c0_i32 = arith.constant 0 : i32
    %c0_i32_0 = arith.constant 0 : i32
    %c0_i32_1 = arith.constant 0 : i32
    return %c0_i32, %c0_i32_0 : i32, i32
  }
  func.func @transform_6(%arg0: i32, %arg1: i32) -> (i32, i32, i32) {
    %c0_i32 = arith.constant 0 : i32
    %c0_i32_0 = arith.constant 0 : i32
    return %arg0, %c0_i32, %arg1 : i32, i32, i32
  }
}

</mosaic_0001>

<bundles_post_ra>
// kernel: tpu_custom_call.1
= control target key start
LH: loop header
LB: loop body
LE: loop exit
PB: predicated region body
PF: predicated region fallthrough
CT: control target
= control target key end

     0   :  { %s2119_s21 = smov 0   ;;  %s2121_s22 = smov 0   ;;  %s2691_s0 = inlined_call_operand.vmem [shape: bf16[2,1,40,20], index: 0, kind: input, shape index: {}]   ;;  %s2692_s1 = inlined_call_operand.vmem [shape: f32[2,40,16], index: 1, kind: input, shape index: {}]   ;;  %s2693_s2 = inlined_call_operand.vmem [shape: bf16[144,120], index: 2, kind: input, shape index: {}]   ;;  %s2694_s3 = inlined_call_operand.vmem [shape: f32[144,1], index: 3, kind: input, shape index: {}]   ;;  %s2695_s4 = inlined_call_operand.vmem [shape: bf16[3,80,144], index: 4, kind: input, shape index: {}]   ;;  %s2696_s5 = inlined_call_operand.vmem [shape: f32[80,1], index: 5, kind: input, shape index: {}]   ;;  %s2697_s6 = inlined_call_operand.vmem [shape: f32[2,40,16], index: 6, kind: output, shape index: {}]  }
   0x1   :  { %s2123_s23 = smov 0  }
   0x2 LB: > { %s28_s24 = sadd.s32 1, %s2074_s22  ;;  %p1717_p0 = scmp.ge.s32.totalorder %s2078_s23, 1  ;;  %s2078_s23 = sphi %s2123_s23, %s16_s23   ;;  %s2074_s22 = sphi %s2121_s22, %s2699_s22   ;;  %s2070_s21 = sphi %s2119_s21, %s2698_s21  }
   0x3   : > { %p30_p1 = scmp.ge.s32.totalorder %s28_s24, 2  ;;  %p247_p2 = scmp.lt.s32.totalorder %s2078_s23, 3 }
   0x5   : > { %s2701_s24 = smov (%p30_p1, %s28_s24), 0  ;;  %p248_p3 = pnand %p1717_p0, %p247_p2 }
   0x6   : > { %p292_p4 = scmp.lt.s32.totalorder (!%p248_p3), %s2070_s21, 1  ;;  %s2080_s29 = smov (!%p248_p3), 126  }
   0x7   : > { %251 = sbr.rel (%p248_p3) target bundleno = 1106 (0x452), region = 44  ;;  %s2081_s30 = smov (!%p248_p3), 127  }
   0x8   : > { %s2083_s7 = smov (!%p248_p3), 2  }
   0xc   : > { %s2703_s21 = smov (!%p292_p4, %s2070_s21), 1  ;;  %v394_v10 = vld [vmem:[%s2694_s3 + $0x70] sm:$0xff]  ;;  %v2082_v11 = vmov 0   ;;  %v391_v12 = vld [vmem:[%s2694_s3 + $0x58] sm:$0xff]  ;;  %v392_v15 = vld [vmem:[%s2694_s3 + $0x60] sm:$0xff]  ;;  %vm357_vm0 = vcmask 1043456  }
   0xd   : > { %s2023_s25 = smul.u32 20, %s2703_s21  ;;  %2053 = vset.pattern.permute.xlu0 %v2082_v11  ;;  %2055 = vset.pattern.permute.xlu2 %v2082_v11  ;;  %v386_v13 = vld [vmem:[%s2694_s3 + $0x30] sm:$0xff]  ;;  %v395_v14 = vld [vmem:[%s2694_s3 + $0x78] sm:$0xff]  ;;  %v385_v19 = vld [vmem:[%s2694_s3 + $0x28] sm:$0xff]  ;;  %vm533_vm1 = vcmask 982016   ;;  %vm690_vm3 = vcmask 142336  }
   0xe   : > { %2054 = vset.pattern.permute.xlu1 %v2082_v11  ;;  %v393_v20 = vld [vmem:[%s2694_s3 + $0x68] sm:$0xff]  ;;  %v390_v21 = vld [vmem:[%s2694_s3 + $0x50] sm:$0xff]  ;;  %v388_v24 = vld [vmem:[%s2694_s3 + $0x40] sm:$0xff] }
   0xf   : > { %s300_s28 = scalar_lea.vmem %s2691_s0, %s2023_s25  ;;  %v389_v25 = vld [vmem:[%s2694_s3 + $0x48] sm:$0xff]  ;;  %v382_v26 = vld [vmem:[%s2694_s3 + $0x10] sm:$0xff]  ;;  %v387_v30 = vld [vmem:[%s2694_s3 + $0x38] sm:$0xff] }
  0x10   : > { %v322_v0 = vld [vmem:[%s300_s28 + $0x10] sm:$0xf]  ;;  %v2143_v1 = vld [vmem:[%s300_s28 + $0x8] sm:$0xff]   ;;  %v2145_v2 = vld [vmem:[%s300_s28] sm:$0xff]  }
  0x11   : > { %v332_v3 = vunpack.c.l.b16 %v322_v0  ;;  %v2014_v4 = vunpack.c.h.b16 %v2143_v1  ;;  %349 = vrot.lane.b32.xlu1 %v2145_v2, %s2080_s29  ;;  %v2022_v5 = vld [vmem:[%s300_s28 + $0x4] sm:$0xff]   ;;  %v2009_v7 = vunpack.c.l.b16 %v2145_v2  ;;  %v383_v36 = vld [vmem:[%s2694_s3 + $0x18] sm:$0xff]  ;;  %v1961_v39 = vld [vmem:[%s2693_s2 + $0x10] sm:$0xff] }
  0x12   : > { %343 = vrot.lane.b32.xlu2 %v2022_v5, %s2081_s30  ;;  %v381_v29 = vld [vmem:[%s2694_s3 + $0x8] sm:$0xff]  ;;  %v384_v31 = vld [vmem:[%s2694_s3 + $0x20] sm:$0xff]  ;;  %v1962_v40 = vld [vmem:[%s2693_s2 + $0x18] sm:$0xff] }
  0x13   : > { %v335_v6 = vpack.c.b16 %v332_v3, %v332_v3  ;;  %v340_v8 = vpack.c.b16 %v332_v3, %v2014_v4  ;;  %v338_v9 = vpack.c.b16 %v2009_v7, %v2009_v7  ;;  %v396_v33 = vld [vmem:[%s2694_s3 + $0x80] sm:$0xff]  ;;  %v397_v34 = vld [vmem:[%s2694_s3 + $0x88] sm:$0xff]  ;;  %v1965_v47 = vld [vmem:[%s2693_s2 + $0x30] sm:$0xff] }
  0x14   : > { %v1959_v35 = vld [vmem:[%s2693_s2] sm:$0xff]  ;;  %v1960_v38 = vld [vmem:[%s2693_s2 + $0x8] sm:$0xff]  ;;  %v1966_v53 = vld [vmem:[%s2693_s2 + $0x38] sm:$0xff] }
  0x15   : > { %353 = vrot.lane.b32.xlu0 %v335_v6, %s2080_s29  ;;  %v380_v37 = vld [vmem:[%s2694_s3] sm:$0xff]  ;;  %v1964_v43 = vld [vmem:[%s2693_s2 + $0x28] sm:$0xff] }
  0x16   : > { %v1963_v41 = vld [vmem:[%s2693_s2 + $0x20] sm:$0xff] }
  0x17   : > { %v1967_v59 = vld [vmem:[%s2693_s2 + $0x40] sm:$0xff] }
  0x19   : > { %345 = vrot.lane.b32.xlu1 %v340_v8, %s2081_s30 }
  0x1a   : > { %341 = vrot.lane.b32.xlu2 %v338_v9, %s2081_s30 }
  0x1d   : > { %351 = vrot.lane.b32.xlu0 %v2143_v1, %s2080_s29 }
  0x21   : > { %475 = vperm.xlu1 %2054, %v395_v14  }
  0x22   : > { %460 = vperm.xlu2 %2055, %v392_v15  }
  0x25   : > { %470 = vperm.xlu0 %2053, %v394_v10  }
  0x29   : > { %465 = vperm.xlu1 %2054, %v393_v20  }
  0x2a   : > { %450 = vperm.xlu2 %2055, %v390_v21  }
  0x2d   : > { %455 = vperm.xlu0 %2053, %v391_v12  }
  0x31   : > { %440 = vperm.xlu1 %2054, %v388_v24  }
  0x32   : > { %445 = vperm.xlu2 %2055, %v389_v25  }
  0x35   : > { %430 = vperm.xlu0 %2053, %v386_v13  }
  0x39   : > { %435 = vperm.xlu1 %2054, %v387_v30  }
  0x3a   : > { %420 = vperm.xlu2 %2055, %v384_v31  }
  0x3d   : > { %425 = vperm.xlu0 %2053, %v385_v19  }
  0x41   : > { %480 = vperm.xlu1 %2054, %v396_v33  }
  0x42   : > { %485 = vperm.xlu2 %2055, %v397_v34  }
  0x45   : > { %410 = vperm.xlu0 %2053, %v382_v26  }
  0x49   : > { %415 = vperm.xlu1 %2054, %v383_v36  }
  0x4a   : > { %400 = vperm.xlu2 %2055, %v380_v37  }
  0x4d   : > { %405 = vperm.xlu0 %2053, %v381_v29  }
  0x6c   : > { %v344_v23 = vpop.permute.xlu2 %343 }
  0x74   : > { %v342_v28 = vpop.permute.xlu2 %341 }
  0x75   : > { %v360_v32 = vsel %vm357_vm0, %v335_v6, %v342_v28 }
  0x7c   : > { %v2235_v42 = vpop.permute.xlu2 %460 }
  0x83   : > { %v350_v18 = vpop.permute.xlu1 %349 }
  0x84   : > { %v2243_v45 = vpop.permute.xlu2 %450 }
  0x87   : > { %v354_v16 = vpop.permute.xlu0 %353 }
  0x88   : > { %v562_v17 = vsel %vm357_vm0, %v354_v16, 0 }
  0x89   : > { %564 = vmatpush.bf16.msra.mxu0 %v562_v17 }
  0x8b   : > { %v346_v27 = vpop.permute.xlu1 %345 }
  0x8c   : > { %v2250_v48 = vpop.permute.xlu2 %445 }
  0x8f   : > { %v352_v22 = vpop.permute.xlu0 %351 }
  0x90   : > { %565 = vmatpush.bf16.msra.mxu0 %v352_v22 }
  0x93   : > { %v2253_v49 = vpop.permute.xlu1 %475 }
  0x94   : > { %566 = vmatpush.bf16.msra.mxu0 %v350_v18  ;;  %v421_v51 = vpop.permute.xlu2 %420 }
  0x97   : > { %v2241_v44 = vpop.permute.xlu0 %470 }
  0x98   : > { %567 = vmatpush.bf16.msra.mxu0 %v346_v27 }
  0x9b   : > { %v2255_v52 = vpop.permute.xlu1 %465 }
  0x9c   : > { %568 = vmatpush.bf16.msra.mxu0 %v344_v23  ;;  %v2261_v55 = vpop.permute.xlu2 %485 }
  0x9f   : > { %v2245_v46 = vpop.permute.xlu0 %455 }
  0xa0   : > { %569 = vmatpush.bf16.msra.mxu0 %v360_v32 }
  0xa3   : > { %v2263_v56 = vpop.permute.xlu1 %440 }
  0xa4   : > { %570 = vmatpush.bf16.msra.mxu0 %v2143_v1  ;;  %v401_v58 = vpop.permute.xlu2 %400 }
  0xa7   : > { %v431_v50 = vpop.permute.xlu0 %430 }
  0xa8   : > { %571 = vmatpush.bf16.msra.mxu0 %v2145_v2 }
  0xab   : > { %1757 = vmatmul.msk.bf16.vlgmr.msra.gmra.mxu0 %vm533_vm1, %v1959_v35  ;;  %v436_v62 = vpop.permute.xlu1 %435 }
  0xaf   : > { %v426_v54 = vpop.permute.xlu0 %425 }
  0xb3   : > { %v2270_v6 = vpop.permute.xlu1 %480 }
  0xb7   : > { %v411_v57 = vpop.permute.xlu0 %410 }
  0xbb   : > { %1758 = vmatmul.msk.bf16.gmra.mxu0 %vm533_vm1, %v1960_v38  ;;  %v416_v14 = vpop.permute.xlu1 %415 }
  0xbf   : > { %v406_v2 = vpop.permute.xlu0 %405 }
  0xcb   : > { %1759 = vmatmul.msk.bf16.gmra.mxu0 %vm533_vm1, %v1961_v39 }
  0xdb   : > { %1760 = vmatmul.msk.bf16.gmra.mxu0 %vm533_vm1, %v1962_v40 }
  0xeb   : > { %1761 = vmatmul.msk.bf16.gmra.mxu0 %vm533_vm1, %v1963_v41 }
  0xfb   : > { %1762 = vmatmul.msk.bf16.gmra.mxu0 %vm533_vm1, %v1964_v43 }
 0x10b   : > { %1763 = vmatmul.msk.bf16.gmra.mxu0 %vm533_vm1, %v1965_v47 }
 0x11b   : > { %1764 = vmatmul.msk.bf16.gmra.mxu0 %vm533_vm1, %v1966_v53 }
 0x128   : > { %v573_v60 = vpop.f32.mrf.mxu0 }
 0x129   : > { %v574_v61 = vadd.f32 %v573_v60, %v401_v58 }
 0x12b   : > { %vm618_vm2 = vcmp.ge.f32.partialorder %v574_v61, 0.0  ;;  %v636_v63 = vmul.f32 0.2, %v574_v61  ;;  %1765 = vmatmul.msk.bf16.gmra.mxu0 %vm533_vm1, %v1967_v59 }
 0x12d   : > { %v654_v0 = vsel %vm618_vm2, %v574_v61, %v636_v63 }
 0x12e   : > { %v672_v1 = vpack.c.bf16 %v654_v0, %v654_v0 }
 0x130   : > { %691 = vst.msk [vmem:[#allocation2] sm:$0xf] %vm690_vm3, %v672_v1  ;;  %v575_v3 = vpop.f32.mrf.mxu0 }
 0x131   : > { %v576_v4 = vadd.f32 %v575_v3, %v406_v2 }
 0x133   : > { %vm619_vm4 = vcmp.ge.f32.partialorder %v576_v4, 0.0  ;;  %v637_v5 = vmul.f32 0.2, %v576_v4 }
 0x135   : > { %v655_v7 = vsel %vm619_vm4, %v576_v4, %v637_v5 }
 0x136   : > { %v673_v8 = vpack.c.bf16 %v655_v7, %v655_v7 }
 0x138   : > { %692 = vst.msk [vmem:[#allocation2 + $0x4] sm:$0xf] %vm690_vm3, %v673_v8  ;;  %v578_v9 = vpop.f32.mrf.mxu0 }
 0x139   : > { %v579_v10 = vadd.f32 %v578_v9, %v411_v57 }
 0x13b   : > { %vm620_vm5 = vcmp.ge.f32.partialorder %v579_v10, 0.0  ;;  %v638_v11 = vmul.f32 0.2, %v579_v10 }
 0x13d   : > { %v656_v12 = vsel %vm620_vm5, %v579_v10, %v638_v11 }
 0x13e   : > { %v674_v13 = vpack.c.bf16 %v656_v12, %v656_v12 }
 0x140   : > { %693 = vst.msk [vmem:[#allocation2 + $0x8] sm:$0xf] %vm690_vm3, %v674_v13  ;;  %v580_v15 = vpop.f32.mrf.mxu0 }
 0x141   : > { %v581_v16 = vadd.f32 %v580_v15, %v416_v14 }
 0x143   : > { %vm621_vm6 = vcmp.ge.f32.partialorder %v581_v16, 0.0  ;;  %v639_v17 = vmul.f32 0.2, %v581_v16 }
 0x145   : > { %v657_v18 = vsel %vm621_vm6, %v581_v16, %v639_v17  ;;  %vm912_vm6 = vcmask 142472  }
 0x146   : > { %v675_v19 = vpack.c.bf16 %v657_v18, %v657_v18 }
 0x148   : > { %694 = vst.msk [vmem:[#allocation2 + $0xc] sm:$0xf] %vm690_vm3, %v675_v19  ;;  %v583_v20 = vpop.f32.mrf.mxu0 }
 0x149   : > { %v584_v21 = vadd.f32 %v583_v20, %v421_v51 }
 0x14b   : > { %vm622_vm7 = vcmp.ge.f32.partialorder %v584_v21, 0.0  ;;  %v640_v22 = vmul.f32 0.2, %v584_v21 }
 0x14d   : > { %v658_v23 = vsel %vm622_vm7, %v584_v21, %v640_v22  ;;  %vm1087_vm7 = vcmask 130048  }
 0x14e   : > { %v676_v24 = vpack.c.bf16 %v658_v23, %v658_v23 }
 0x150   : > { %695 = vst.msk [vmem:[#allocation2 + $0x10] sm:$0xf] %vm690_vm3, %v676_v24  ;;  %v585_v25 = vpop.f32.mrf.mxu0 }
 0x151   : > { %v586_v26 = vadd.f32 %v585_v25, %v426_v54 }
 0x153   : > { %vm623_vm8 = vcmp.ge.f32.partialorder %v586_v26, 0.0  ;;  %v641_v27 = vmul.f32 0.2, %v586_v26 }
 0x155   : > { %v659_v28 = vsel %vm623_vm8, %v586_v26, %v641_v27 }
 0x156   : > { %v677_v29 = vpack.c.bf16 %v659_v28, %v659_v28 }
 0x158   : > { %696 = vst.msk [vmem:[#allocation2 + $0x14] sm:$0xf] %vm690_vm3, %v677_v29  ;;  %v588_v30 = vpop.f32.mrf.mxu0 }
 0x159   : > { %v589_v31 = vadd.f32 %v588_v30, %v431_v50 }
 0x15b   : > { %vm624_vm9 = vcmp.ge.f32.partialorder %v589_v31, 0.0  ;;  %v642_v32 = vmul.f32 0.2, %v589_v31 }
 0x15d   : > { %v660_v33 = vsel %vm624_vm9, %v589_v31, %v642_v32  ;;  %v715_v32 = vld [vmem:[#allocation2 + $0x8] sm:$0xf] }
 0x15e   : > { %v678_v34 = vpack.c.bf16 %v660_v33, %v660_v33 }
 0x15f   : > { %v718_v26 = vld [vmem:[#allocation2 + $0x14] sm:$0xf] }
 0x160   : > { %697 = vst.msk [vmem:[#allocation2 + $0x18] sm:$0xf] %vm690_vm3, %v678_v34  ;;  %v590_v35 = vpop.f32.mrf.mxu0 }
 0x161   : > { %v591_v36 = vadd.f32 %v590_v35, %v436_v62 }
 0x163   : > { %vm625_vm10 = vcmp.ge.f32.partialorder %v591_v36, 0.0  ;;  %v643_v37 = vmul.f32 0.2, %v591_v36 }
 0x165   : > { %v661_v38 = vsel %vm625_vm10, %v591_v36, %v643_v37 }
 0x166   : > { %v679_v39 = vpack.c.bf16 %v661_v38, %v661_v38 }
 0x167   : > { %v719_v21 = vld [vmem:[#allocation2 + $0x18] sm:$0xf] }
 0x168   : > { %698 = vst.msk [vmem:[#allocation2 + $0x1c] sm:$0xf] %vm690_vm3, %v679_v39  ;;  %v593_v40 = vpop.f32.mrf.mxu0  ;;  %v714_v39 = vld [vmem:[#allocation2 + $0x4] sm:$0xf] }
 0x169   : > { %v594_v41 = vadd.f32 %v593_v40, %v2263_v56 }
 0x16b   : > { %vm626_vm11 = vcmp.ge.f32.partialorder %v594_v41, 0.0  ;;  %v644_v43 = vmul.f32 0.2, %v594_v41 }
 0x16d   : > { %v662_v47 = vsel %vm626_vm11, %v594_v41, %v644_v43  ;;  %v716_v41 = vld [vmem:[#allocation2 + $0xc] sm:$0xf] }
 0x16e   : > { %v680_v50 = vpack.c.bf16 %v662_v47, %v662_v47  ;;  %v713_v47 = vld [vmem:[#allocation2] sm:$0xf] }
 0x170   : > { %699 = vst.msk [vmem:[#allocation2 + $0x20] sm:$0xf] %vm690_vm3, %v680_v50  ;;  %v595_v51 = vpop.f32.mrf.mxu0 }
 0x171   : > { %v596_v53 = vadd.f32 %v595_v51, %v2250_v48 }
 0x173   : > { %vm627_vm12 = vcmp.ge.f32.partialorder %v596_v53, 0.0  ;;  %v645_v54 = vmul.f32 0.2, %v596_v53 }
 0x175   : > { %v663_v57 = vsel %vm627_vm12, %v596_v53, %v645_v54 }
 0x176   : > { %v681_v58 = vpack.c.bf16 %v663_v57, %v663_v57 }
 0x177   : > { %v721_v59 = vld [vmem:[#allocation2 + $0x20] sm:$0xf] }
 0x178   : > { %700 = vst.msk [vmem:[#allocation2 + $0x24] sm:$0xf] %vm690_vm3, %v681_v58  ;;  %v598_v60 = vpop.f32.mrf.mxu0  ;;  %765 = vrot.lane.b32.xlu1 %v721_v59, %s2080_s29 }
 0x179   : > { %v599_v56 = vadd.f32 %v598_v60, %v2243_v45 }
 0x17b   : > { %vm628_vm13 = vcmp.ge.f32.partialorder %v599_v56, 0.0  ;;  %v646_v61 = vmul.f32 0.2, %v599_v56 }
 0x17d   : > { %v664_v62 = vsel %vm628_vm13, %v599_v56, %v646_v61 }
 0x17e   : > { %v682_v63 = vpack.c.bf16 %v664_v62, %v664_v62 }
 0x17f   : > { %v722_v40 = vld [vmem:[#allocation2 + $0x24] sm:$0xf] }
 0x180   : > { %701 = vst.msk [vmem:[#allocation2 + $0x28] sm:$0xf] %vm690_vm3, %v682_v63  ;;  %v600_v0 = vpop.f32.mrf.mxu0 }
 0x181   : > { %v601_v48 = vadd.f32 %v600_v0, %v2245_v46 }
 0x183   : > { %vm629_vm14 = vcmp.ge.f32.partialorder %v601_v48, 0.0  ;;  %v647_v1 = vmul.f32 0.2, %v601_v48 }
 0x185   : > { %v665_v2 = vsel %vm629_vm14, %v601_v48, %v647_v1 }
 0x186   : > { %v683_v3 = vpack.c.bf16 %v665_v2, %v665_v2 }
 0x187   : > { %v723_v4 = vld [vmem:[#allocation2 + $0x28] sm:$0xf] }
 0x188   : > { %702 = vst.msk [vmem:[#allocation2 + $0x2c] sm:$0xf] %vm690_vm3, %v683_v3  ;;  %v603_v5 = vpop.f32.mrf.mxu0  ;;  %769 = vrot.lane.b32.xlu2 %v723_v4, %s2080_s29 }
 0x189   : > { %v604_v45 = vadd.f32 %v603_v5, %v2235_v42 }
 0x18b   : > { %vm630_vm15 = vcmp.ge.f32.partialorder %v604_v45, 0.0  ;;  %v648_v7 = vmul.f32 0.2, %v604_v45 }
 0x18d   : > { %v666_v8 = vsel %vm630_vm15, %v604_v45, %v648_v7 }
 0x18e   : > { %v684_v9 = vpack.c.bf16 %v666_v8, %v666_v8 }
 0x18f   : > { %v724_v10 = vld [vmem:[#allocation2 + $0x2c] sm:$0xf] }
 0x190   : > { %703 = vst.msk [vmem:[#allocation2 + $0x30] sm:$0xf] %vm690_vm3, %v684_v9  ;;  %v605_v46 = vpop.f32.mrf.mxu0  ;;  %771 = vrot.lane.b32.xlu0 %v724_v10, %s2080_s29 }
 0x191   : > { %v606_v11 = vadd.f32 %v605_v46, %v2255_v52 }
 0x193   : > { %vm631_vm0 = vcmp.ge.f32.partialorder %v606_v11, 0.0  ;;  %v649_v12 = vmul.f32 0.2, %v606_v11 }
 0x195   : > { %v667_v13 = vsel %vm631_vm0, %v606_v11, %v649_v12 }
 0x196   : > { %v685_v14 = vpack.c.bf16 %v667_v13, %v667_v13 }
 0x197   : > { %v725_v15 = vld [vmem:[#allocation2 + $0x30] sm:$0xf] }
 0x198   : > { %704 = vst.msk [vmem:[#allocation2 + $0x34] sm:$0xf] %vm690_vm3, %v685_v14  ;;  %v608_v42 = vpop.f32.mrf.mxu0  ;;  %773 = vrot.lane.b32.xlu0 %v725_v15, %s2080_s29 }
 0x199   : > { %v609_v16 = vadd.f32 %v608_v42, %v2241_v44 }
 0x19b   : > { %vm632_vm1 = vcmp.ge.f32.partialorder %v609_v16, 0.0  ;;  %v650_v17 = vmul.f32 0.2, %v609_v16 }
 0x19d   : > { %v668_v18 = vsel %vm632_vm1, %v609_v16, %v650_v17 }
 0x19e   : > { %v686_v19 = vpack.c.bf16 %v668_v18, %v668_v18 }
 0x19f   : > { %v726_v20 = vld [vmem:[#allocation2 + $0x34] sm:$0xf] }
 0x1a0   : > { %705 = vst.msk [vmem:[#allocation2 + $0x38] sm:$0xf] %vm690_vm3, %v686_v19  ;;  %v610_v52 = vpop.f32.mrf.mxu0  ;;  %775 = vrot.lane.b32.xlu1 %v726_v20, %s2080_s29  ;;  %761 = vrot.lane.b32.xlu0 %v719_v21, %s2080_s29 }
 0x1a1   : > { %v611_v22 = vadd.f32 %v610_v52, %v2253_v49  ;;  %v720_v49 = vld [vmem:[#allocation2 + $0x1c] sm:$0xf] }
 0x1a3   : > { %vm633_vm2 = vcmp.ge.f32.partialorder %v611_v22, 0.0  ;;  %v651_v23 = vmul.f32 0.2, %v611_v22 }
 0x1a5   : > { %v669_v24 = vsel %vm633_vm2, %v611_v22, %v651_v23 }
 0x1a6   : > { %v687_v25 = vpack.c.bf16 %v669_v24, %v669_v24 }
 0x1a7   : > { %v727_v44 = vld [vmem:[#allocation2 + $0x38] sm:$0xf] }
 0x1a8   : > { %706 = vst.msk [vmem:[#allocation2 + $0x3c] sm:$0xf] %vm690_vm3, %v687_v25  ;;  %v613_v27 = vpop.f32.mrf.mxu0  ;;  %777 = vrot.lane.b32.xlu1 %v727_v44, %s2080_s29  ;;  %759 = vrot.lane.b32.xlu0 %v718_v26, %s2080_s29 }
 0x1a9   : > { %v614_v28 = vadd.f32 %v613_v27, %v2270_v6 }
 0x1ab   : > { %vm634_vm4 = vcmp.ge.f32.partialorder %v614_v28, 0.0  ;;  %v652_v29 = vmul.f32 0.2, %v614_v28 }
 0x1ad   : > { %v670_v30 = vsel %vm634_vm4, %v614_v28, %v652_v29 }
 0x1ae   : > { %v688_v31 = vpack.c.bf16 %v670_v30, %v670_v30 }
 0x1af   : > { %v728_v33 = vld [vmem:[#allocation2 + $0x3c] sm:$0xf] }
 0x1b0   : > { %707 = vst.msk [vmem:[#allocation2 + $0x40] sm:$0xf] %vm690_vm3, %v688_v31  ;;  %v615_v34 = vpop.f32.mrf.mxu0  ;;  %763 = vrot.lane.b32.xlu1 %v720_v49, %s2080_s29  ;;  %753 = vrot.lane.b32.xlu0 %v715_v32, %s2080_s29 }
 0x1b1   : > { %v616_v35 = vadd.f32 %v615_v34, %v2261_v55  ;;  %779 = vrot.lane.b32.xlu2 %v728_v33, %s2080_s29  ;;  %v717_v55 = vld [vmem:[#allocation2 + $0x10] sm:$0xf] }
 0x1b3   : > { %vm635_vm5 = vcmp.ge.f32.partialorder %v616_v35, 0.0  ;;  %v653_v6 = vmul.f32 0.2, %v616_v35 }
 0x1b5   : > { %v671_v36 = vsel %vm635_vm5, %v616_v35, %v653_v6 }
 0x1b6   : > { %v689_v37 = vpack.c.bf16 %v671_v36, %v671_v36 }
 0x1b7   : > { %v729_v38 = vld [vmem:[#allocation2 + $0x40] sm:$0xf] }
 0x1b8   : > { %708 = vst.msk [vmem:[#allocation2 + $0x44] sm:$0xf] %vm690_vm3, %v689_v37  ;;  %781 = vrot.lane.b32.xlu1 %v729_v38, %s2080_s29  ;;  %751 = vrot.lane.b32.xlu0 %v714_v39, %s2080_s29  ;;  %vm803_vm3 = vcmask 3072  }
 0x1b9   : > { %767 = vrot.lane.b32.xlu2 %v722_v40, %s2080_s29 }
 0x1bf   : > { %v730_v43 = vld [vmem:[#allocation2 + $0x44] sm:$0xf] }
 0x1c0   : > { %755 = vrot.lane.b32.xlu1 %v716_v41, %s2080_s29 }
 0x1c1   : > { %757 = vrot.lane.b32.xlu2 %v717_v55, %s2080_s29 }
 0x1c9   : > { %783 = vrot.lane.b32.xlu2 %v730_v43, %s2080_s29 }
 0x1d1   : > { %749 = vrot.lane.b32.xlu2 %v713_v47, %s2080_s29  ;;  %v1484_v47 = vld [vmem:[%s2696_s5] sm:$0xff] }
 0x1e2   : > { %v770_v50 = vpop.permute.xlu2 %769 }
 0x1e3   : > { %814 = vst.msk [vmem:[#allocation2 + $0x28] sm:$0xf] %vm803_vm3, %v770_v50  ;;  %v1486_v50 = vld [vmem:[%s2696_s5 + $0x10] sm:$0xff] }
 0x1ea   : > { %v766_v51 = vpop.permute.xlu1 %765  ;;  %v832_v53 = vld [vmem:[#allocation2 + $0x28] sm:$0xf] }
 0x1eb   : > { %812 = vst.msk [vmem:[#allocation2 + $0x20] sm:$0xf] %vm803_vm3, %v766_v51  ;;  %878 = vrot.lane.b32.xlu2 %v832_v53, %s2083_s7  ;;  %v1485_v51 = vld [vmem:[%s2696_s5 + $0x8] sm:$0xff]  ;;  %v1487_v53 = vld [vmem:[%s2696_s5 + $0x18] sm:$0xff] }
 0x1f2   : > { %v830_v54 = vld [vmem:[#allocation2 + $0x20] sm:$0xf] }
 0x1f3   : > { %874 = vrot.lane.b32.xlu1 %v830_v54, %s2083_s7  ;;  %v1489_v54 = vld [vmem:[%s2696_s5 + $0x28] sm:$0xff] }
 0x202   : > { %v772_v57 = vpop.permute.xlu0 %771 }
 0x203   : > { %815 = vst.msk [vmem:[#allocation2 + $0x2c] sm:$0xf] %vm803_vm3, %v772_v57  ;;  %v1488_v57 = vld [vmem:[%s2696_s5 + $0x20] sm:$0xff] }
 0x20a   : > { %v774_v58 = vpop.permute.xlu0 %773  ;;  %v833_v59 = vld [vmem:[#allocation2 + $0x2c] sm:$0xf] }
 0x20b   : > { %816 = vst.msk [vmem:[#allocation2 + $0x30] sm:$0xf] %vm803_vm3, %v774_v58  ;;  %v780_v60 = vpop.permute.xlu2 %779  ;;  %880 = vrot.lane.b32.xlu0 %v833_v59, %s2083_s7  ;;  %v1490_v58 = vld [vmem:[%s2696_s5 + $0x30] sm:$0xff]  ;;  %v1492_v59 = vld [vmem:[%s2696_s5 + $0x40] sm:$0xff] }
 0x20c   : > { %819 = vst.msk [vmem:[#allocation2 + $0x3c] sm:$0xf] %vm803_vm3, %v780_v60  ;;  %v1491_v60 = vld [vmem:[%s2696_s5 + $0x38] sm:$0xff] }
 0x212   : > { %v776_v56 = vpop.permute.xlu1 %775  ;;  %v762_v61 = vpop.permute.xlu0 %761  ;;  %v834_v62 = vld [vmem:[#allocation2 + $0x30] sm:$0xf] }
 0x213   : > { %817 = vst.msk [vmem:[#allocation2 + $0x34] sm:$0xf] %vm803_vm3, %v776_v56  ;;  %v768_v63 = vpop.permute.xlu2 %767  ;;  %882 = vrot.lane.b32.xlu0 %v834_v62, %s2083_s7  ;;  %v837_v0 = vld [vmem:[#allocation2 + $0x3c] sm:$0xf]  ;;  %v1493_v56 = vld [vmem:[%s2696_s5 + $0x48] sm:$0xff] }
 0x214   : > { %810 = vst.msk [vmem:[#allocation2 + $0x18] sm:$0xf] %vm803_vm3, %v762_v61  ;;  %888 = vrot.lane.b32.xlu2 %v837_v0, %s2083_s7  ;;  %v1859_v61 = vld [vmem:[%s2695_s4] sm:$0xf]  ;;  %v1969_v62 = vld [vmem:[%s2695_s4 + $0x4] sm:$0xf0] }
 0x215   : > { %813 = vst.msk [vmem:[#allocation2 + $0x24] sm:$0xf] %vm803_vm3, %v768_v63  ;;  %v1860_v63 = vor.u32 %v1969_v62, %v1859_v61  ;;  %v1924_v61 = vld [vmem:[%s2695_s4 + $0xb8] sm:$0xf0] }
 0x21a   : > { %v778_v48 = vpop.permute.xlu1 %777  ;;  %v760_v1 = vpop.permute.xlu0 %759  ;;  %v835_v2 = vld [vmem:[#allocation2 + $0x34] sm:$0xf] }
 0x21b   : > { %818 = vst.msk [vmem:[#allocation2 + $0x38] sm:$0xf] %vm803_vm3, %v778_v48  ;;  %v758_v3 = vpop.permute.xlu2 %757  ;;  %884 = vrot.lane.b32.xlu1 %v835_v2, %s2083_s7  ;;  %v828_v4 = vld [vmem:[#allocation2 + $0x18] sm:$0xf] }
 0x21c   : > { %809 = vst.msk [vmem:[#allocation2 + $0x14] sm:$0xf] %vm803_vm3, %v760_v1  ;;  %870 = vrot.lane.b32.xlu0 %v828_v4, %s2083_s7  ;;  %v831_v5 = vld [vmem:[#allocation2 + $0x24] sm:$0xf]  ;;  %v1867_v48 = vld [vmem:[%s2695_s4 + $0x10] sm:$0xf] }
 0x21d   : > { %808 = vst.msk [vmem:[#allocation2 + $0x10] sm:$0xf] %vm803_vm3, %v758_v3  ;;  %876 = vrot.lane.b32.xlu2 %v831_v5, %s2083_s7  ;;  %v1971_v1 = vld [vmem:[%s2695_s4 + $0x14] sm:$0xf0] }
 0x21e   : > { %v1868_v2 = vor.u32 %v1971_v1, %v1867_v48  ;;  %v1968_v1 = vld [vmem:[%s2695_s4 + $0x4] sm:$0xf] }
 0x222   : > { %v764_v45 = vpop.permute.xlu1 %763  ;;  %v754_v7 = vpop.permute.xlu0 %753  ;;  %v836_v8 = vld [vmem:[#allocation2 + $0x38] sm:$0xf] }
 0x223   : > { %811 = vst.msk [vmem:[#allocation2 + $0x1c] sm:$0xf] %vm803_vm3, %v764_v45  ;;  %v784_v9 = vpop.permute.xlu2 %783  ;;  %886 = vrot.lane.b32.xlu1 %v836_v8, %s2083_s7  ;;  %v827_v10 = vld [vmem:[#allocation2 + $0x14] sm:$0xf]  ;;  %v1987_v45 = vld [vmem:[%s2695_s4 + $0x54] sm:$0xf] }
 0x224   : > { %806 = vst.msk [vmem:[#allocation2 + $0x8] sm:$0xf] %vm803_vm3, %v754_v7  ;;  %868 = vrot.lane.b32.xlu0 %v827_v10, %s2083_s7  ;;  %v826_v46 = vld [vmem:[#allocation2 + $0x10] sm:$0xf]  ;;  %v1780_v7 = vld [vmem:[%s2695_s4 + $0x58] sm:$0xf0] }
 0x225   : > { %821 = vst.msk [vmem:[#allocation2 + $0x44] sm:$0xf] %vm803_vm3, %v784_v9  ;;  %866 = vrot.lane.b32.xlu2 %v826_v46, %s2083_s7  ;;  %v1783_v10 = vor.u32 %v1987_v45, %v1780_v7  ;;  %v1875_v46 = vld [vmem:[%s2695_s4 + $0x20] sm:$0xf] }
 0x226   : > { %v1914_v7 = vld [vmem:[%s2695_s4 + $0xa0] sm:$0xf] }
 0x22a   : > { %v782_v11 = vpop.permute.xlu1 %781  ;;  %v752_v12 = vpop.permute.xlu0 %751  ;;  %v829_v13 = vld [vmem:[#allocation2 + $0x1c] sm:$0xf] }
 0x22b   : > { %820 = vst.msk [vmem:[#allocation2 + $0x40] sm:$0xf] %vm803_vm3, %v782_v11  ;;  %v750_v14 = vpop.permute.xlu2 %749  ;;  %872 = vrot.lane.b32.xlu1 %v829_v13, %s2083_s7  ;;  %v824_v15 = vld [vmem:[#allocation2 + $0x8] sm:$0xf]  ;;  %v1973_v11 = vld [vmem:[%s2695_s4 + $0x24] sm:$0xf0] }
 0x22c   : > { %805 = vst.msk [vmem:[#allocation2 + $0x4] sm:$0xf] %vm803_vm3, %v752_v12  ;;  %862 = vrot.lane.b32.xlu0 %v824_v15, %s2083_s7  ;;  %v839_v42 = vld [vmem:[#allocation2 + $0x44] sm:$0xf]  ;;  %v1876_v12 = vor.u32 %v1973_v11, %v1875_v46 }
 0x22d   : > { %804 = vst.msk [vmem:[#allocation2] sm:$0xf] %vm803_vm3, %v750_v14  ;;  %892 = vrot.lane.b32.xlu2 %v839_v42, %s2083_s7  ;;  %v1778_v42 = vld [vmem:[%s2695_s4 + $0x50] sm:$0xf]  ;;  %v1869_v46 = vld [vmem:[%s2695_s4 + $0x18] sm:$0xf0] }
 0x232   : > { %v756_v16 = vpop.permute.xlu1 %755  ;;  %v838_v17 = vld [vmem:[#allocation2 + $0x40] sm:$0xf] }
 0x233   : > { %807 = vst.msk [vmem:[#allocation2 + $0xc] sm:$0xf] %vm803_vm3, %v756_v16  ;;  %890 = vrot.lane.b32.xlu1 %v838_v17, %s2083_s7  ;;  %v823_v18 = vld [vmem:[#allocation2 + $0x4] sm:$0xf]  ;;  %v1988_v16 = vld [vmem:[%s2695_s4 + $0x54] sm:$0xf0] }
 0x234   : > { %860 = vrot.lane.b32.xlu0 %v823_v18, %s2083_s7  ;;  %v822_v19 = vld [vmem:[#allocation2] sm:$0xf]  ;;  %v1779_v18 = vor.u32 %v1988_v16, %v1778_v42  ;;  %v1922_v42 = vld [vmem:[%s2695_s4 + $0xb0] sm:$0xf] }
 0x235   : > { %858 = vrot.lane.b32.xlu2 %v822_v19, %s2083_s7  ;;  %v1989_v19 = vld [vmem:[%s2695_s4 + $0x64] sm:$0xf]  ;;  %v2000_v16 = vld [vmem:[%s2695_s4 + $0xb4] sm:$0xf0] }
 0x23a   : > { %v825_v20 = vld [vmem:[#allocation2 + $0xc] sm:$0xf] }
 0x23b   : > { %864 = vrot.lane.b32.xlu1 %v825_v20, %s2083_s7  ;;  %v1788_v20 = vld [vmem:[%s2695_s4 + $0x68] sm:$0xf0] }
 0x245   : > { %v879_v21 = vpop.permute.xlu2 %878 }
 0x246   : > { %923 = vst.msk [vmem:[#allocation2 + $0x28] sm:$0xf] %vm912_vm6, %v879_v21 }
 0x265   : > { %v875_v52 = vpop.permute.xlu1 %874 }
 0x266   : > { %921 = vst.msk [vmem:[#allocation2 + $0x20] sm:$0xf] %vm912_vm6, %v875_v52 }
 0x26e   : > { %v889_v22 = vpop.permute.xlu2 %888 }
 0x26f   : > { %928 = vst.msk [vmem:[#allocation2 + $0x3c] sm:$0xf] %vm912_vm6, %v889_v22  ;;  %v1791_v22 = vor.u32 %v1989_v19, %v1788_v20  ;;  %v1877_v19 = vld [vmem:[%s2695_s4 + $0x28] sm:$0xf0] }
 0x277   : > { %v877_v23 = vpop.permute.xlu2 %876 }
 0x278   : > { %922 = vst.msk [vmem:[#allocation2 + $0x24] sm:$0xf] %vm912_vm6, %v877_v23  ;;  %v1883_v23 = vld [vmem:[%s2695_s4 + $0x30] sm:$0xf] }
 0x27d   : > { %v881_v24 = vpop.permute.xlu0 %880 }
 0x27e   : > { %924 = vst.msk [vmem:[#allocation2 + $0x2c] sm:$0xf] %vm912_vm6, %v881_v24  ;;  %v1975_v24 = vld [vmem:[%s2695_s4 + $0x34] sm:$0xf0] }
 0x27f   : > { %v867_v25 = vpop.permute.xlu2 %866  ;;  %v1982_v39 = vld [vmem:[#allocation2 + $0x20] sm:$0xff] }
 0x280   : > { %917 = vst.msk [vmem:[#allocation2 + $0x10] sm:$0xf] %vm912_vm6, %v867_v25  ;;  %v1884_v25 = vor.u32 %v1975_v24, %v1883_v23  ;;  %v1930_v24 = vld [vmem:[%s2695_s4 + $0xc0] sm:$0xf] }
 0x285   : > { %v883_v44 = vpop.permute.xlu0 %882  ;;  %v1983_v26 = vld [vmem:[#allocation2 + $0x28] sm:$0xff] }
 0x286   : > { %925 = vst.msk [vmem:[#allocation2 + $0x30] sm:$0xf] %vm912_vm6, %v883_v44  ;;  %1070 = vrot.lane.b32.xlu0 %v1983_v26, %s2081_s30 }
 0x287   : > { %v893_v27 = vpop.permute.xlu2 %892 }
 0x288   : > { %930 = vst.msk [vmem:[#allocation2 + $0x44] sm:$0xf] %vm912_vm6, %v893_v27  ;;  %v1786_v27 = vld [vmem:[%s2695_s4 + $0x60] sm:$0xf] }
 0x28d   : > { %v885_v28 = vpop.permute.xlu1 %884 }
 0x28e   : > { %926 = vst.msk [vmem:[#allocation2 + $0x34] sm:$0xf] %vm912_vm6, %v885_v28  ;;  %v871_v29 = vpop.permute.xlu0 %870  ;;  %v1990_v28 = vld [vmem:[%s2695_s4 + $0x64] sm:$0xf0] }
 0x28f   : > { %919 = vst.msk [vmem:[#allocation2 + $0x18] sm:$0xf] %vm912_vm6, %v871_v29  ;;  %v859_v30 = vpop.permute.xlu2 %858 }
 0x290   : > { %913 = vst.msk [vmem:[#allocation2] sm:$0xf] %vm912_vm6, %v859_v30  ;;  %v1787_v30 = vor.u32 %v1990_v28, %v1786_v27  ;;  %v1974_v27 = vld [vmem:[%s2695_s4 + $0x34] sm:$0xf]  ;;  %v1885_v28 = vld [vmem:[%s2695_s4 + $0x38] sm:$0xf0] }
 0x295   : > { %v887_v31 = vpop.permute.xlu1 %886  ;;  %v1984_v49 = vld [vmem:[#allocation2 + $0x30] sm:$0xff] }
 0x296   : > { %927 = vst.msk [vmem:[#allocation2 + $0x38] sm:$0xf] %vm912_vm6, %v887_v31  ;;  %v869_v32 = vpop.permute.xlu0 %868  ;;  %1072 = vrot.lane.b32.xlu2 %v1984_v49, %s2081_s30  ;;  %v1991_v31 = vld [vmem:[%s2695_s4 + $0x74] sm:$0xf] }
 0x297   : > { %918 = vst.msk [vmem:[#allocation2 + $0x14] sm:$0xf] %vm912_vm6, %v869_v32 }
 0x29d   : > { %v873_v33 = vpop.permute.xlu1 %872  ;;  %v1985_v34 = vld [vmem:[#allocation2 + $0x38] sm:$0xff] }
 0x29e   : > { %920 = vst.msk [vmem:[#allocation2 + $0x1c] sm:$0xf] %vm912_vm6, %v873_v33  ;;  %v863_v35 = vpop.permute.xlu0 %862  ;;  %v1980_v6 = vld [vmem:[#allocation2 + $0x10] sm:$0xff]  ;;  %1074 = vrot.lane.b32.xlu1 %v1985_v34, %s2081_s30  ;;  %1240 = vmatpush.bf16.msra.mxu3 %v1985_v34 }
 0x29f   : > { %915 = vst.msk [vmem:[#allocation2 + $0x8] sm:$0xf] %vm912_vm6, %v863_v35  ;;  %1064 = vrot.lane.b32.xlu0 %v1980_v6, %s2081_s30  ;;  %v1977_v35 = vld [vmem:[%s2695_s4 + $0x44] sm:$0xf0] }
 0x2a2   : > { %1241 = vmatpush.bf16.msra.mxu3 %v1984_v49 }
 0x2a5   : > { %v891_v36 = vpop.permute.xlu1 %890  ;;  %v1981_v37 = vld [vmem:[#allocation2 + $0x18] sm:$0xff] }
 0x2a6   : > { %929 = vst.msk [vmem:[#allocation2 + $0x40] sm:$0xf] %vm912_vm6, %v891_v36  ;;  %v861_v38 = vpop.permute.xlu0 %860  ;;  %1066 = vrot.lane.b32.xlu2 %v1981_v37, %s2081_s30  ;;  %1242 = vmatpush.bf16.msra.mxu3 %v1983_v26 }
 0x2a7   : > { %914 = vst.msk [vmem:[#allocation2 + $0x4] sm:$0xf] %vm912_vm6, %v861_v38  ;;  %1068 = vrot.lane.b32.xlu1 %v1982_v39, %s2081_s30  ;;  %v1794_v38 = vld [vmem:[%s2695_s4 + $0x70] sm:$0xf] }
 0x2aa   : > { %1243 = vmatpush.bf16.msra.mxu3 %v1982_v39 }
 0x2ad   : > { %v865_v40 = vpop.permute.xlu1 %864  ;;  %v2376_v41 = vld [vmem:[#allocation2 + $0x40] sm:$0xff] }
 0x2ae   : > { %916 = vst.msk [vmem:[#allocation2 + $0xc] sm:$0xf] %vm912_vm6, %v865_v40  ;;  %v1978_v55 = vld [vmem:[#allocation2] sm:$0xff]  ;;  %1244 = vmatpush.bf16.msra.mxu3 %v1981_v37 }
 0x2af   : > { %1076 = vrot.lane.b32.xlu1 %v2376_v41, %s2081_s30  ;;  %1060 = vrot.lane.b32.xlu0 %v1978_v55, %s2081_s30 }
 0x2b2   : > { %1245 = vmatpush.bf16.msra.mxu3 %v1980_v6 }
 0x2b5   : > { %v1979_v43 = vld [vmem:[#allocation2 + $0x8] sm:$0xff] }
 0x2b6   : > { %1062 = vrot.lane.b32.xlu2 %v1979_v43, %s2081_s30  ;;  %1246 = vmatpush.bf16.msra.mxu3 %v1979_v43  ;;  %s2024_s30 = smul.u32 40, %s2703_s21 }
 0x2b7   : > { %1378 = vrot.lane.b32.xlu1 %v1985_v34, %s2080_s29  ;;  %1374 = vrot.lane.b32.xlu0 %v1983_v26, %s2080_s29  ;;  %v1891_v34 = vld [vmem:[%s2695_s4 + $0x40] sm:$0xf] }
 0x2b8   : > { %s2641_s10 = scalar_lea.vmem %s2692_s1, %s2024_s30  ;;  %s2663_s13 = scalar_lea.vmem %s2697_s6, %s2024_s30 }
 0x2ba   : > { %1247 = vmatpush.bf16.msra.mxu3 %v1978_v55 }
 0x2bd   : > { %1248 = vmatmul.bf16.vlgmr.msra.gmra.mxu3 %v1860_v63  ;;  %v1810_v63 = vld [vmem:[%s2695_s4 + $0x90] sm:$0xf] }
 0x2be   : > { %1376 = vrot.lane.b32.xlu2 %v1984_v49, %s2080_s29  ;;  %v1796_v49 = vld [vmem:[%s2695_s4 + $0x78] sm:$0xf0] }
 0x2bf   : > { %1372 = vrot.lane.b32.xlu1 %v1982_v39, %s2080_s29  ;;  %1368 = vrot.lane.b32.xlu0 %v1980_v6, %s2080_s29  ;;  %v1799_v33 = vor.u32 %v1991_v31, %v1796_v49  ;;  %v1892_v6 = vor.u32 %v1977_v35, %v1891_v34  ;;  %v1992_v39 = vld [vmem:[%s2695_s4 + $0x74] sm:$0xf0]  ;;  %v1938_v49 = vld [vmem:[%s2695_s4 + $0xd0] sm:$0xf] }
 0x2c0   : > { %v1795_v40 = vor.u32 %v1992_v39, %v1794_v38 }
 0x2c6   : > { %1370 = vrot.lane.b32.xlu2 %v1981_v37, %s2080_s29 }
 0x2c7   : > { %1380 = vrot.lane.b32.xlu1 %v2376_v41, %s2080_s29  ;;  %1364 = vrot.lane.b32.xlu0 %v1978_v55, %s2080_s29  ;;  %v1804_v55 = vld [vmem:[%s2695_s4 + $0x88] sm:$0xf0] }
 0x2cd   : > { %1253 = vmatmul.bf16.gmra.mxu3 %v1868_v2  ;;  %v1861_v2 = vld [vmem:[%s2695_s4 + $0x8] sm:$0xf0] }
 0x2ce   : > { %1366 = vrot.lane.b32.xlu2 %v1979_v43, %s2080_s29 }
 0x2cf   : > { %1496 = vperm.xlu1 %2054, %v1484_v47   ;;  %1506 = vperm.xlu0 %2053, %v1486_v50   ;;  %v1997_v47 = vld [vmem:[%s2695_s4 + $0xa4] sm:$0xf]  ;;  %v1916_v50 = vld [vmem:[%s2695_s4 + $0xa8] sm:$0xf0] }
 0x2d6   : > { %1501 = vperm.xlu2 %2055, %v1485_v51   ;;  %v1919_v51 = vor.u32 %v1997_v47, %v1916_v50  ;;  %v1946_v50 = vld [vmem:[%s2695_s4 + $0xe0] sm:$0xf] }
 0x2d7   : > { %1511 = vperm.xlu1 %2054, %v1487_v53   ;;  %1521 = vperm.xlu0 %2053, %v1489_v54   ;;  %v1802_v53 = vld [vmem:[%s2695_s4 + $0x80] sm:$0xf]  ;;  %v1994_v54 = vld [vmem:[%s2695_s4 + $0x84] sm:$0xf0] }
 0x2dd   : > { %1258 = vmatmul.bf16.gmra.mxu3 %v1876_v12  ;;  %v2003_v12 = vld [vmem:[%s2695_s4 + $0xd4] sm:$0xf] }
 0x2de   : > { %1516 = vperm.xlu2 %2055, %v1488_v57   ;;  %v1803_v57 = vor.u32 %v1994_v54, %v1802_v53 }
 0x2df   : > { %1526 = vperm.xlu1 %2054, %v1490_v58   ;;  %1536 = vperm.xlu0 %2053, %v1492_v59   ;;  %v1995_v58 = vld [vmem:[%s2695_s4 + $0x94] sm:$0xf]  ;;  %v1812_v59 = vld [vmem:[%s2695_s4 + $0x98] sm:$0xf0] }
 0x2e6   : > { %1531 = vperm.xlu2 %2055, %v1491_v60   ;;  %v1815_v60 = vor.u32 %v1995_v58, %v1812_v59 }
 0x2e7   : > { %1541 = vperm.xlu1 %2054, %v1493_v56   ;;  %v1999_v56 = vld [vmem:[%s2695_s4 + $0xb4] sm:$0xf] }
 0x2e8   : > { %v1927_v62 = vor.u32 %v1999_v56, %v1924_v61 }
 0x2ed   : > { %1263 = vmatmul.bf16.gmra.mxu3 %v1884_v25  ;;  %v2002_v25 = vld [vmem:[%s2695_s4 + $0xc4] sm:$0xf0] }
 0x2f0   : > { %v1073_v3 = vpop.permute.xlu2 %1072 }
 0x2f8   : > { %v1071_v4 = vpop.permute.xlu0 %1070 }
 0x2fd   : > { %1268 = vmatmul.bf16.gmra.mxu3 %v1892_v6  ;;  %v1976_v6 = vld [vmem:[%s2695_s4 + $0x44] sm:$0xf] }
 0x300   : > { %v1067_v8 = vpop.permute.xlu2 %1066 }
 0x310   : > { %v1075_v0 = vpop.permute.xlu1 %1074  ;;  %v1063_v14 = vpop.permute.xlu2 %1062 }
 0x311   : > { %1103 = vmatpush.bf16.msra.mxu1 %v1075_v0  ;;  %v1065_v13 = vpop.permute.xlu0 %1064  ;;  %v1996_v0 = vld [vmem:[%s2695_s4 + $0x94] sm:$0xf0] }
 0x312   : > { %v1811_v48 = vor.u32 %v1996_v0, %v1810_v63 }
 0x315   : > { %1104 = vmatpush.bf16.msra.mxu1 %v1073_v3  ;;  %v1864_v3 = vor.u32 %v1968_v1, %v1861_v2 }
 0x318   : > { %v1377_v21 = vpop.permute.xlu2 %1376 }
 0x319   : > { %v1069_v5 = vpop.permute.xlu1 %1068  ;;  %1105 = vmatpush.bf16.msra.mxu1 %v1071_v4  ;;  %v2001_v4 = vld [vmem:[%s2695_s4 + $0xc4] sm:$0xf] }
 0x31d   : > { %1106 = vmatpush.bf16.msra.mxu1 %v1069_v5  ;;  %v1932_v5 = vld [vmem:[%s2695_s4 + $0xc8] sm:$0xf0] }
 0x31e   : > { %v1935_v45 = vor.u32 %v2001_v4, %v1932_v5 }
 0x320   : > { %v1371_v29 = vpop.permute.xlu2 %1370 }
 0x321   : > { %v1077_v9 = vpop.permute.xlu1 %1076  ;;  %1107 = vmatpush.bf16.msra.mxu1 %v1067_v8  ;;  %v1061_v17 = vpop.permute.xlu0 %1060  ;;  %v1998_v8 = vld [vmem:[%s2695_s4 + $0xa4] sm:$0xf0] }
 0x322   : > { %1144 = vmatpush.bf16.msra.mxu2 %v1077_v9  ;;  %v1915_v9 = vor.u32 %v1998_v8, %v1914_v7 }
 0x325   : > { %1852 = vmatmul.msk.bf16.vlgmr.msra.gmra.mxu2 %vm1087_vm7, %v1783_v10  ;;  %1108 = vmatpush.bf16.msra.mxu1 %v1065_v13  ;;  %v1970_v10 = vld [vmem:[%s2695_s4 + $0x14] sm:$0xf]  ;;  %v1940_v13 = vld [vmem:[%s2695_s4 + $0xd8] sm:$0xf0] }
 0x326   : > { %1281 = vmatpush.bf16.msrb.mxu2 %v2376_v41  ;;  %v1993_v41 = vld [vmem:[%s2695_s4 + $0x84] sm:$0xf]  ;;  %v1872_v11 = vor.u32 %v1970_v10, %v1869_v46 }
 0x327   : > { %v1807_v43 = vor.u32 %v1993_v41, %v1804_v55 }
 0x328   : > { %v1367_v36 = vpop.permute.xlu2 %1366 }
 0x329   : > { %v1379_v15 = vpop.permute.xlu1 %1378  ;;  %1109 = vmatpush.bf16.msra.mxu1 %v1063_v14  ;;  %v1375_v44 = vpop.permute.xlu0 %1374  ;;  %v1943_v14 = vor.u32 %v2003_v12, %v1940_v13 }
 0x32d   : > { %1110 = vmatpush.bf16.msra.mxu1 %v1061_v17  ;;  %v1923_v17 = vor.u32 %v2000_v16, %v1922_v42 }
 0x330   : > { %1111 = vmatmul.bf16.vlgmr.msra.gmra.mxu1 %v1779_v18  ;;  %v1972_v18 = vld [vmem:[%s2695_s4 + $0x24] sm:$0xf] }
 0x331   : > { %1406 = vmatpush.bf16.msrb.mxu1 %v1379_v15  ;;  %v1373_v52 = vpop.permute.xlu1 %1372  ;;  %v1369_v32 = vpop.permute.xlu0 %1368  ;;  %v1880_v20 = vor.u32 %v1972_v18, %v1877_v19 }
 0x335   : > { %1407 = vmatpush.bf16.msrb.mxu1 %v1377_v21  ;;  %1853 = vmatmul.msk.bf16.gmra.mxu2 %vm1087_vm7, %v1791_v22  ;;  %v1948_v22 = vld [vmem:[%s2695_s4 + $0xe8] sm:$0xf0] }
 0x339   : > { %1408 = vmatpush.bf16.msrb.mxu1 %v1375_v44  ;;  %v1381_v26 = vpop.permute.xlu1 %1380  ;;  %v1365_v37 = vpop.permute.xlu0 %1364 }
 0x33a   : > { %1447 = vmatpush.bf16.msrb.mxu3 %v1381_v26  ;;  %v1931_v26 = vor.u32 %v2002_v25, %v1930_v24 }
 0x33d   : > { %1409 = vmatpush.bf16.msrb.mxu1 %v1373_v52  ;;  %1952 = vmatmul.msk.bf16.vlgmr.msrb.gmra.mxu3 %vm1087_vm7, %v1919_v51  ;;  %v2005_v52 = vld [vmem:[%s2695_s4 + $0xe4] sm:$0xf]  ;;  %v2006_v51 = vld [vmem:[%s2695_s4 + $0xe4] sm:$0xf0] }
 0x33e   : > { %v1951_v23 = vor.u32 %v2005_v52, %v1948_v22  ;;  %v1947_v54 = vor.u32 %v2006_v51, %v1946_v50 }
 0x340   : > { %1116 = vmatmul.bf16.gmra.mxu1 %v1787_v30  ;;  %v1249_v15 = vpop.f32.mrf.mxu3 }
 0x341   : > { %1410 = vmatpush.bf16.msrb.mxu1 %v1371_v29  ;;  %v1888_v29 = vor.u32 %v1974_v27, %v1885_v28 }
 0x345   : > { %1411 = vmatpush.bf16.msrb.mxu1 %v1369_v32  ;;  %1854 = vmatmul.msk.bf16.gmra.mxu2 %vm1087_vm7, %v1799_v33  ;;  %v2004_v32 = vld [vmem:[%s2695_s4 + $0xd4] sm:$0xf0] }
 0x346   : > { %v1939_v33 = vor.u32 %v2004_v32, %v1938_v49 }
 0x348   : > { %v1251_v21 = vpop.f32.mrf.mxu3 }
 0x349   : > { %1412 = vmatpush.bf16.msrb.mxu1 %v1367_v36  ;;  %v1893_v36 = vld [vmem:[%s2695_s4 + $0x48] sm:$0xf0] }
 0x34d   : > { %1413 = vmatpush.bf16.msrb.mxu1 %v1365_v37  ;;  %1953 = vmatmul.msk.bf16.gmra.mxu3 %vm1087_vm7, %v1927_v62 }
 0x350   : > { %1121 = vmatmul.bf16.gmra.mxu1 %v1795_v40  ;;  %v1254_v44 = vpop.f32.mrf.mxu3  ;;  %v1896_v40 = vor.u32 %v1976_v6, %v1893_v36 }
 0x355   : > { %1855 = vmatmul.msk.bf16.gmra.mxu2 %vm1087_vm7, %v1807_v43 }
 0x358   : > { %v1256_v30 = vpop.f32.mrf.mxu3 }
 0x35d   : > { %1954 = vmatmul.msk.bf16.gmra.mxu3 %vm1087_vm7, %v1935_v45 }
 0x360   : > { %1126 = vmatmul.bf16.gmra.mxu1 %v1803_v57  ;;  %v1259_v37 = vpop.f32.mrf.mxu3 }
 0x365   : > { %1856 = vmatmul.msk.bf16.gmra.mxu2 %vm1087_vm7, %v1815_v60 }
 0x368   : > { %v1261_v53 = vpop.f32.mrf.mxu3 }
 0x36d   : > { %1955 = vmatmul.msk.bf16.gmra.mxu3 %vm1087_vm7, %v1943_v14 }
 0x370   : > { %1131 = vmatmul.bf16.gmra.mxu1 %v1811_v48  ;;  %v1264_v56 = vpop.f32.mrf.mxu3 }
 0x375   : > { %1897 = vmatmul.msk.bf16.vlgmr.msrb.gmra.mxu2 %vm1087_vm7, %v1864_v3 }
 0x378   : > { %v1266_v1 = vpop.f32.mrf.mxu3 }
 0x37d   : > { %1956 = vmatmul.msk.bf16.gmra.mxu3 %vm1087_vm7, %v1951_v23 }
 0x380   : > { %1414 = vmatmul.bf16.vlgmr.msrb.gmra.mxu1 %v1915_v9  ;;  %v1269_v7 = vpop.f32.mrf.mxu3 }
 0x385   : > { %1898 = vmatmul.msk.bf16.gmra.mxu2 %vm1087_vm7, %v1872_v11 }
 0x388   : > { %v1271_v13 = vpop.f32.mrf.mxu3 }
 0x390   : > { %1419 = vmatmul.bf16.gmra.mxu1 %v1923_v17 }
 0x395   : > { %1899 = vmatmul.msk.bf16.gmra.mxu2 %vm1087_vm7, %v1880_v20 }
 0x3a0   : > { %1424 = vmatmul.bf16.gmra.mxu1 %v1931_v26 }
 0x3a5   : > { %1900 = vmatmul.msk.bf16.gmra.mxu2 %vm1087_vm7, %v1888_v29 }
 0x3a8   : > { %v1146_v31 = vpop.f32.mrf.mxu2 }
 0x3ad   : > { %v1112_v34 = vpop.f32.mrf.mxu1 }
 0x3ae   : > { %v1147_v35 = vadd.f32 %v1146_v31, %v1112_v34  ;;  %v1497_v31 = vpop.permute.xlu1 %1496 }
 0x3b0   : > { %v1250_v38 = vadd.f32 %v1249_v15, %v1147_v35  ;;  %v1148_v39 = vpop.f32.mrf.mxu2  ;;  %1429 = vmatmul.bf16.gmra.mxu1 %v1939_v33  ;;  %v1584_v35 = vld [vmem:[%s2641_s10] sm:$0xff] }
 0x3b5   : > { %1901 = vmatmul.msk.bf16.gmra.mxu2 %vm1087_vm7, %v1896_v40  ;;  %v1114_v41 = vpop.f32.mrf.mxu1  ;;  %v1502_v40 = vpop.permute.xlu2 %1501 }
 0x3b6   : > { %v1149_v55 = vadd.f32 %v1148_v39, %v1114_v41 }
 0x3b8   : > { %v1252_v43 = vadd.f32 %v1251_v21, %v1149_v55  ;;  %v1151_v47 = vpop.f32.mrf.mxu2 }
 0x3bd   : > { %v1117_v57 = vpop.f32.mrf.mxu1 }
 0x3be   : > { %v1152_v58 = vadd.f32 %v1151_v47, %v1117_v57 }
 0x3c0   : > { %v2619_v59 = vadd.f32 %v1254_v44, %v1152_v58  ;;  %v1153_v60 = vpop.f32.mrf.mxu2  ;;  %1434 = vmatmul.bf16.gmra.mxu1 %v1947_v54  ;;  %v1449_v17 = vpop.f32.mrf.mxu3  ;;  %v1585_v54 = vld [vmem:[%s2641_s10 + $0x8] sm:$0xff] }
 0x3c5   : > { %v1119_v61 = vpop.f32.mrf.mxu1 }
 0x3c6   : > { %v1154_v62 = vadd.f32 %v1153_v60, %v1119_v61  ;;  %v1507_v61 = vpop.permute.xlu0 %1506 }
 0x3c8   : > { %v2621_v63 = vadd.f32 %v1256_v30, %v1154_v62  ;;  %v1156_v0 = vpop.f32.mrf.mxu2  ;;  %v1451_v22 = vpop.f32.mrf.mxu3 }
 0x3cd   : > { %v1122_v48 = vpop.f32.mrf.mxu1 }
 0x3ce   : > { %v1157_v2 = vadd.f32 %v1156_v0, %v1122_v48 }
 0x3d0   : > { %v2623_v3 = vadd.f32 %v1259_v37, %v1157_v2  ;;  %v1158_v4 = vpop.f32.mrf.mxu2  ;;  %v1454_v28 = vpop.f32.mrf.mxu3 }
 0x3d5   : > { %v1124_v5 = vpop.f32.mrf.mxu1 }
 0x3d6   : > { %v1159_v45 = vadd.f32 %v1158_v4, %v1124_v5  ;;  %v1586_v5 = vld [vmem:[%s2641_s10 + $0x10] sm:$0xff] }
 0x3d8   : > { %v2625_v8 = vadd.f32 %v1261_v53, %v1159_v45  ;;  %v1161_v9 = vpop.f32.mrf.mxu2  ;;  %v1456_v55 = vpop.f32.mrf.mxu3 }
 0x3dd   : > { %v1127_v10 = vpop.f32.mrf.mxu1 }
 0x3de   : > { %v1162_v46 = vadd.f32 %v1161_v9, %v1127_v10 }
 0x3e0   : > { %v2627_v11 = vadd.f32 %v1264_v56, %v1162_v46  ;;  %v1163_v12 = vpop.f32.mrf.mxu2  ;;  %v1459_v48 = vpop.f32.mrf.mxu3 }
 0x3e1   : > { %v1512_v46 = vpop.permute.xlu1 %1511 }
 0x3e5   : > { %v1129_v14 = vpop.f32.mrf.mxu1 }
 0x3e6   : > { %v1164_v15 = vadd.f32 %v1163_v12, %v1129_v14 }
 0x3e8   : > { %v2629_v42 = vadd.f32 %v1266_v1, %v1164_v15  ;;  %v1166_v16 = vpop.f32.mrf.mxu2 }
 0x3ed   : > { %v1132_v18 = vpop.f32.mrf.mxu1 }
 0x3ee   : > { %v1167_v19 = vadd.f32 %v1166_v16, %v1132_v18  ;;  %v1461_v16 = vpop.f32.mrf.mxu3  ;;  %v1587_v18 = vld [vmem:[%s2641_s10 + $0x18] sm:$0xff] }
 0x3f0   : > { %v2631_v20 = vadd.f32 %v1269_v7, %v1167_v19  ;;  %v1168_v21 = vpop.f32.mrf.mxu2 }
 0x3f5   : > { %v1134_v52 = vpop.f32.mrf.mxu1 }
 0x3f6   : > { %v1169_v23 = vadd.f32 %v1168_v21, %v1134_v52 }
 0x3f8   : > { %v2633_v24 = vadd.f32 %v1271_v13, %v1169_v23  ;;  %v1283_v25 = vpop.f32.mrf.mxu2  ;;  %v1517_v23 = vpop.permute.xlu2 %1516 }
 0x3f9   : > { %v1284_v26 = vadd.f32 %v1283_v25, %v1250_v38 }
 0x3fd   : > { %v1415_v44 = vpop.f32.mrf.mxu1 }
 0x3fe   : > { %v1450_v27 = vadd.f32 %v1449_v17, %v1415_v44 }
 0x400   : > { %v1474_v29 = vadd.f32 %v1450_v27, %v1284_v26  ;;  %v1285_v30 = vpop.f32.mrf.mxu2 }
 0x401   : > { %v1286_v6 = vadd.f32 %v1285_v30, %v1252_v43 }
 0x402   : > { %v1544_v49 = vadd.f32 %v1497_v31, %v1474_v29  ;;  %v1588_v29 = vld [vmem:[%s2641_s10 + $0x20] sm:$0xff] }
 0x404   : > { %vm1554_vm8 = vcmp.ge.f32.partialorder %v1544_v49, 0.0  ;;  %v1564_v32 = vmul.f32 0.2, %v1544_v49 }
 0x405   : > { %v1417_v33 = vpop.f32.mrf.mxu1 }
 0x406   : > { %v1574_v34 = vsel %vm1554_vm8, %v1544_v49, %v1564_v32  ;;  %v1452_v36 = vadd.f32 %v1451_v22, %v1417_v33  ;;  %v1464_v32 = vpop.f32.mrf.mxu3 }
 0x407   : > { %v1589_v37 = vadd.f32 1.0, %v1574_v34  ;;  %v1522_v34 = vpop.permute.xlu0 %1521 }
 0x408   : > { %v1475_v38 = vadd.f32 %v1452_v36, %v1286_v6  ;;  %v1288_v39 = vpop.f32.mrf.mxu2 }
 0x409   : > { %v2644_v41 = vmul.f32 %v1589_v37, %v1584_v35  ;;  %v1289_v57 = vadd.f32 %v1288_v39, %v2619_v59 }
 0x40a   : > { %v1545_v47 = vadd.f32 %v1502_v40, %v1475_v38 }
 0x40c   : > { %vm1555_vm9 = vcmp.ge.f32.partialorder %v1545_v47, 0.0  ;;  %v1565_v50 = vmul.f32 0.2, %v1545_v47 }
 0x40d   : > { %v1420_v51 = vpop.f32.mrf.mxu1 }
 0x40e   : > { %v1575_v53 = vsel %vm1555_vm9, %v1545_v47, %v1565_v50  ;;  %v1455_v58 = vadd.f32 %v1454_v28, %v1420_v51  ;;  %v1527_v50 = vpop.permute.xlu1 %1526  ;;  %v1466_v51 = vpop.f32.mrf.mxu3 }
 0x40f   : > { %v1590_v60 = vadd.f32 1.0, %v1575_v53 }
 0x410   : > { %v1476_v43 = vadd.f32 %v1455_v58, %v1289_v57  ;;  %v1290_v56 = vpop.f32.mrf.mxu2 }
 0x411   : > { %v2648_v62 = vmul.f32 %v1590_v60, %v1585_v54  ;;  %v1291_v45 = vadd.f32 %v1290_v56, %v2621_v63 }
 0x412   : > { %v1546_v0 = vadd.f32 %v1507_v61, %v1476_v43 }
 0x414   : > { %vm1556_vm10 = vcmp.ge.f32.partialorder %v1546_v0, 0.0  ;;  %v1566_v1 = vmul.f32 0.2, %v1546_v0 }
 0x415   : > { %v1422_v2 = vpop.f32.mrf.mxu1 }
 0x416   : > { %v1576_v4 = vsel %vm1556_vm10, %v1546_v0, %v1566_v1  ;;  %v1457_v7 = vadd.f32 %v1456_v55, %v1422_v2 }
 0x417   : > { %v1591_v9 = vadd.f32 1.0, %v1576_v4 }
 0x418   : > { %v1477_v59 = vadd.f32 %v1457_v7, %v1291_v45  ;;  %v1293_v10 = vpop.f32.mrf.mxu2 }
 0x419   : > { %v2652_v12 = vmul.f32 %v1591_v9, %v1586_v5  ;;  %v1294_v19 = vadd.f32 %v1293_v10, %v2623_v3 }
 0x41a   : > { %v1547_v13 = vadd.f32 %v1512_v46, %v1477_v59 }
 0x41c   : > { %vm1557_vm11 = vcmp.ge.f32.partialorder %v1547_v13, 0.0  ;;  %v1567_v14 = vmul.f32 0.2, %v1547_v13 }
 0x41d   : > { %v1425_v15 = vpop.f32.mrf.mxu1 }
 0x41e   : > { %v1577_v17 = vsel %vm1557_vm11, %v1547_v13, %v1567_v14  ;;  %v1460_v21 = vadd.f32 %v1459_v48, %v1425_v15  ;;  %v1469_v48 = vpop.f32.mrf.mxu3 }
 0x41f   : > { %v1592_v52 = vadd.f32 1.0, %v1577_v17 }
 0x420   : > { %v1478_v63 = vadd.f32 %v1460_v21, %v1294_v19  ;;  %v1295_v22 = vpop.f32.mrf.mxu2 }
 0x421   : > { %v1597_v25 = vmul.f32 %v1592_v52, %v1587_v18  ;;  %v1296_v30 = vadd.f32 %v1295_v22, %v2625_v8  ;;  %v1542_v18 = vpop.permute.xlu1 %1541 }
 0x422   : > { %v1548_v44 = vadd.f32 %v1517_v23, %v1478_v63 }
 0x424   : > { %vm1558_vm12 = vcmp.ge.f32.partialorder %v1548_v44, 0.0  ;;  %v1568_v26 = vmul.f32 0.2, %v1548_v44 }
 0x425   : > { %v1427_v27 = vpop.f32.mrf.mxu1 }
 0x426   : > { %v1578_v28 = vsel %vm1558_vm12, %v1548_v44, %v1568_v26  ;;  %v1462_v31 = vadd.f32 %v1461_v16, %v1427_v27  ;;  %v1471_v13 = vpop.f32.mrf.mxu3 }
 0x427   : > { %v1593_v49 = vadd.f32 1.0, %v1578_v28 }
 0x428   : > { %v1479_v33 = vadd.f32 %v1462_v31, %v1296_v30  ;;  %v1298_v3 = vpop.f32.mrf.mxu2 }
 0x429   : > { %v1598_v35 = vmul.f32 %v1593_v49, %v1588_v29  ;;  %v1299_v8 = vadd.f32 %v1298_v3, %v2627_v11 }
 0x42a   : > { %v1549_v6 = vadd.f32 %v1522_v34, %v1479_v33 }
 0x42c   : > { %vm1559_vm13 = vcmp.ge.f32.partialorder %v1549_v6, 0.0  ;;  %v1569_v36 = vmul.f32 0.2, %v1549_v6 }
 0x42d   : > { %v1430_v37 = vpop.f32.mrf.mxu1 }
 0x42e   : > { %v1579_v38 = vsel %vm1559_vm13, %v1549_v6, %v1569_v36  ;;  %v1465_v39 = vadd.f32 %v1464_v32, %v1430_v37 }
 0x42f   : > { %v1599_v40 = vadd.f32 %v2644_v41, %v1579_v38  ;;  %v1532_v41 = vpop.permute.xlu2 %1531 }
 0x430   : > { %v1480_v55 = vadd.f32 %v1465_v39, %v1299_v8  ;;  %v1300_v47 = vpop.f32.mrf.mxu2 }
 0x431   : > { %1604 = vst.msk [vmem:[%s2663_s13] sm:$0xff] %vm1087_vm7, %v1599_v40  ;;  %v1301_v60 = vadd.f32 %v1300_v47, %v2629_v42 }
 0x432   : > { %v1550_v53 = vadd.f32 %v1527_v50, %v1480_v55 }
 0x434   : > { %vm1560_vm14 = vcmp.ge.f32.partialorder %v1550_v53, 0.0  ;;  %v1570_v54 = vmul.f32 0.2, %v1550_v53 }
 0x435   : > { %v1432_v57 = vpop.f32.mrf.mxu1 }
 0x436   : > { %v1580_v58 = vsel %vm1560_vm14, %v1550_v53, %v1570_v54  ;;  %v1467_v43 = vadd.f32 %v1466_v51, %v1432_v57 }
 0x437   : > { %v1600_v11 = vadd.f32 %v2648_v62, %v1580_v58  ;;  %v1537_v62 = vpop.permute.xlu0 %1536 }
 0x438   : > { %v1481_v56 = vadd.f32 %v1467_v43, %v1301_v60  ;;  %v1303_v61 = vpop.f32.mrf.mxu2 }
 0x439   : > { %1605 = vst.msk [vmem:[%s2663_s13 + $0x8] sm:$0xff] %vm1087_vm7, %v1600_v11  ;;  %v1304_v5 = vadd.f32 %v1303_v61, %v2631_v20 }
 0x43a   : > { %v1551_v0 = vadd.f32 %v1532_v41, %v1481_v56 }
 0x43c   : > { %vm1561_vm15 = vcmp.ge.f32.partialorder %v1551_v0, 0.0  ;;  %v1571_v1 = vmul.f32 0.2, %v1551_v0 }
 0x43d   : > { %v1435_v2 = vpop.f32.mrf.mxu1 }
 0x43e   : > { %v1581_v4 = vsel %vm1561_vm15, %v1551_v0, %v1571_v1  ;;  %v1470_v45 = vadd.f32 %v1469_v48, %v1435_v2 }
 0x43f   : > { %v1601_v42 = vadd.f32 %v2652_v12, %v1581_v4 }
 0x440   : > { %v1482_v7 = vadd.f32 %v1470_v45, %v1304_v5  ;;  %v1305_v59 = vpop.f32.mrf.mxu2 }
 0x441   : > { %1606 = vst.msk [vmem:[%s2663_s13 + $0x10] sm:$0xff] %vm1087_vm7, %v1601_v42  ;;  %v1306_v15 = vadd.f32 %v1305_v59, %v2633_v24 }
 0x442   : > { %v1552_v9 = vadd.f32 %v1537_v62, %v1482_v7 }
 0x444   : > { %vm1562_vm0 = vcmp.ge.f32.partialorder %v1552_v9, 0.0  ;;  %v1572_v10 = vmul.f32 0.2, %v1552_v9 }
 0x445   : > { %v1437_v46 = vpop.f32.mrf.mxu1 }
 0x446   : > { %v1582_v14 = vsel %vm1562_vm0, %v1552_v9, %v1572_v10  ;;  %v1472_v16 = vadd.f32 %v1471_v13, %v1437_v46 }
 0x447   : > { %v1602_v20 = vadd.f32 %v1597_v25, %v1582_v14 }
 0x448   : > { %v1483_v17 = vadd.f32 %v1472_v16, %v1306_v15 }
 0x449   : > { %1607 = vst.msk [vmem:[%s2663_s13 + $0x18] sm:$0xff] %vm1087_vm7, %v1602_v20 }
 0x44a   : > { %v1553_v12 = vadd.f32 %v1542_v18, %v1483_v17 }
 0x44c   : > { %vm1563_vm1 = vcmp.ge.f32.partialorder %v1553_v12, 0.0  ;;  %v1573_v19 = vmul.f32 0.2, %v1553_v12 }
 0x44e   : > { %v1583_v21 = vsel %vm1563_vm1, %v1553_v12, %v1573_v19 }
 0x44f   : > { %v1603_v52 = vadd.f32 %v1598_v35, %v1583_v21 }
 0x451   : > { %1608 = vst.msk [vmem:[%s2663_s13 + $0x20] sm:$0xff] %vm1087_vm7, %v1603_v52 }
 0x452 PF: > { %s16_s23 = sadd.s32 1, %s2078_s23   ;;  %s2698_s21 = smov %s2074_s22 }
 0x453   : > { %p13_p5 = scmp.ge.s32.totalorder %s16_s23, 4   ;;  %s2699_s22 = smov %s2701_s24 }
 0x455   :  { %15 = sbr.rel (!%p13_p5) target bundleno = 2 (0x2), region = 83 }

</bundles_post_ra>
